<compile_context>
chip_gen: v7x
topology: tpu7x:2x2x1
jax: 0.10.0
libtpu: 0.0.40
codegen_flags: <defaults>
</compile_context>

<pallas_src>
import functools
import math

import jax
import jax.numpy as jnp
from jax import lax
from jax.experimental import pallas as pl
from jax.experimental.pallas import tpu as pltpu

ALPHA = 0.1    # APPNP teleport probability
K_PROP = 10    # APPNP propagation steps
LANES = 128    # TPU lane width


def _masked_log_softmax(z, n_valid):
    """log_softmax over the first `n_valid` columns of a lane-padded [R, CP] tile."""
    col = lax.broadcasted_iota(jnp.int32, z.shape, 1)
    valid = col < n_valid
    m = jnp.max(jnp.where(valid, z, -1e30), axis=1, keepdims=True)
    s = z - m
    e = jnp.exp(jnp.where(valid, s, -1e30))        # exactly 0 for pad columns
    lse = jnp.log(jnp.sum(e, axis=1, keepdims=True))
    return s - lse


def _mlp(x_ref, w1_ref, b1_ref, w2_ref, b2_ref):
    # relu(x @ W1 + b1) @ W2 + b2; bf16 MXU operands, f32 accumulation.
    h = jnp.dot(x_ref[...], w1_ref[...],
                preferred_element_type=jnp.float32) + b1_ref[...]
    h = jnp.maximum(h, 0.0).astype(jnp.bfloat16)
    h = jnp.dot(h, w2_ref[...],
                preferred_element_type=jnp.float32) + b2_ref[...]
    return h    # f32, class dim lane-padded to a multiple of 128


# ---------------------------------------------------------------------------
# Path A: fused kernel, adjacency fully resident in VMEM (small / medium N).
# ---------------------------------------------------------------------------
def _appnp_fused_kernel(x_ref, adj_ref, w1_ref, b1_ref, w2_ref, b2_ref, o_ref,
                        *, n_classes):
    h = _mlp(x_ref, w1_ref, b1_ref, w2_ref, b2_ref)           # (N, CP) f32
    ah = ALPHA * h                                            # hoisted
    adj = adj_ref[...]                                        # (N, N) bf16
    z = h
    for _ in range(K_PROP):                                   # static unroll
        z = (1.0 - ALPHA) * jnp.dot(
            adj, z.astype(jnp.bfloat16),
            preferred_element_type=jnp.float32) + ah
    o_ref[...] = _masked_log_softmax(z, n_classes)


# ---------------------------------------------------------------------------
# Path B: row-tiled kernel, streams adjacency row blocks; z lives in a
# ping-pong VMEM scratch shared across the whole grid (larger N / v7x VMEM).
# ---------------------------------------------------------------------------
def _appnp_tiled_kernel(x_ref, adj_ref, w1_ref, b1_ref, w2_ref, b2_ref, o_ref,
                        ah_s, za_s, zb_s, *, n_classes, block_rows):
    k = pl.program_id(0)              # 0 = MLP pass, 1..K_PROP = propagation
    i = pl.program_id(1)              # node-row tile
    row0 = pl.multiple_of(i * block_rows, 8)
    rows = pl.ds(row0, block_rows)

    @pl.when(k == 0)
    def _init():
        h = _mlp(x_ref, w1_ref, b1_ref, w2_ref, b2_ref)       # (TM, CP) f32
        za_s[rows, :] = h                                     # z_0 = h
        ah_s[rows, :] = ALPHA * h                              # hoisted alpha*h

    def _prop(src_ref, dst_ref):
        z_prev = src_ref[...].astype(jnp.bfloat16)            # full (N, CP)
        z_new = (1.0 - ALPHA) * jnp.dot(
            adj_ref[...], z_prev,
            preferred_element_type=jnp.float32) + ah_s[rows, :]
        dst_ref[rows, :] = z_new

        @pl.when(k == K_PROP)
        def _final():
            o_ref[...] = _masked_log_softmax(z_new, n_classes)

    p_even = lax.rem(k - 1, 2) == 0   # propagation-step parity (ping-pong)

    @pl.when(jnp.logical_and(k > 0, p_even))
    def _step_even():
        _prop(za_s, zb_s)

    @pl.when(jnp.logical_and(k > 0, jnp.logical_not(p_even)))
    def _step_odd():
        _prop(zb_s, za_s)


def _pick_block_rows(n):
    for cand in (512, 256, 128, 64, 32, 16, 8):
        if n % cand == 0:
            return cand
    raise ValueError("number of nodes must be a multiple of 8")


def appnp_concat_forward(x, adj, w1, b1, w2, b2, *, force_tiled=False,
                         block_rows=None):
    """x:[N,Fin], adj:[N,N] GCN-normalized dense, w1:[Fin,H], b1:[1,H],
    w2:[H,C], b2:[1,C].  Returns [N,C] f32 log-probabilities."""
    N, Fin = x.shape
    H = w1.shape[1]
    C = w2.shape[1]
    CP = ((C + LANES - 1) // LANES) * LANES   # lane-dense class dim

    # bf16 MXU operands (accumulation stays f32 inside the kernel); zero-pad
    # the class dim so the propagated state and the output store are full-lane.
    x_bf = x.astype(jnp.bfloat16)
    adj_bf = adj.astype(jnp.bfloat16)
    w1_bf = w1.astype(jnp.bfloat16)
    w2_bf = jnp.pad(w2, ((0, 0), (0, CP - C))).astype(jnp.bfloat16)
    b1_f = b1.astype(jnp.float32)
    b2_f = jnp.pad(b2.astype(jnp.float32), ((0, 0), (0, CP - C)))

    # Resident-adjacency path iff the (double-buffered) bf16 adjacency fits
    # comfortably under the raised VMEM budget.
    adj_vmem_bytes = 2 * (N * N * 2)
    use_tiled = force_tiled or adj_vmem_bytes > 24 * 1024 * 1024

    compiler_kw = dict(vmem_limit_bytes=64 * 1024 * 1024)

    if not use_tiled:
        out_p = pl.pallas_call(
            functools.partial(_appnp_fused_kernel, n_classes=C),
            out_shape=jax.ShapeDtypeStruct((N, CP), jnp.float32),
            grid=(1,),
            in_specs=[
                pl.BlockSpec((N, Fin), lambda i: (0, 0)),
                pl.BlockSpec((N, N), lambda i: (0, 0)),
                pl.BlockSpec((Fin, H), lambda i: (0, 0)),
                pl.BlockSpec((1, H), lambda i: (0, 0)),
                pl.BlockSpec((H, CP), lambda i: (0, 0)),
                pl.BlockSpec((1, CP), lambda i: (0, 0)),
            ],
            out_specs=pl.BlockSpec((N, CP), lambda i: (0, 0)),
            compiler_params=pltpu.CompilerParams(
                dimension_semantics=("arbitrary",), **compiler_kw),
        )(x_bf, adj_bf, w1_bf, b1_f, w2_bf, b2_f)
    else:
        tm = block_rows if block_rows is not None else _pick_block_rows(N)
        assert N % tm == 0 and tm % 8 == 0, "block_rows must divide N, mult of 8"
        n_tiles = N // tm
        # K is the outer axis (global dependency through the z ping-pong
        # scratch); row tiles inner.  Both axes must be "arbitrary" because the
        # z scratch is shared across all row tiles of a step.
        # TODO(synk): a megacore-parallel row axis would need z in shared
        # memory (pltpu.CMEM / VMEM_SHARED); left single-core sequential here.
        out_p = pl.pallas_call(
            functools.partial(_appnp_tiled_kernel, n_classes=C, block_rows=tm),
            out_shape=jax.ShapeDtypeStruct((N, CP), jnp.float32),
            grid=(K_PROP + 1, n_tiles),
            in_specs=[
                pl.BlockSpec((tm, Fin), lambda k, i: (i, 0)),
                pl.BlockSpec((tm, N), lambda k, i: (i, 0)),
                pl.BlockSpec((Fin, H), lambda k, i: (0, 0)),
                pl.BlockSpec((1, H), lambda k, i: (0, 0)),
                pl.BlockSpec((H, CP), lambda k, i: (0, 0)),
                pl.BlockSpec((1, CP), lambda k, i: (0, 0)),
            ],
            out_specs=pl.BlockSpec((tm, CP), lambda k, i: (i, 0)),
            scratch_shapes=[
                pltpu.VMEM((N, CP), jnp.float32),   # alpha * h
                pltpu.VMEM((N, CP), jnp.float32),   # z ping
                pltpu.VMEM((N, CP), jnp.float32),   # z pong
            ],
            compiler_params=pltpu.CompilerParams(
                dimension_semantics=("arbitrary", "arbitrary"), **compiler_kw),
        )(x_bf, adj_bf, w1_bf, b1_f, w2_bf, b2_f)

    return out_p[:, :C]


# ------------------------------- references --------------------------------
def reference_forward_f32(x, adj, w1, b1, w2, b2):
    h = jnp.maximum(x @ w1 + b1, 0.0)
    h = h @ w2 + b2
    z = h
    for _ in range(K_PROP):
        z = (1.0 - ALPHA) * (adj @ z) + ALPHA * h
    return jax.nn.log_softmax(z, axis=1)


def reference_forward_bf16(x, adj, w1, b1, w2, b2):
    # Mirrors the kernel's mixed precision (bf16 MXU operands, f32 accumulate).
    xb, ab = x.astype(jnp.bfloat16), adj.astype(jnp.bfloat16)
    w1b, w2b = w1.astype(jnp.bfloat16), w2.astype(jnp.bfloat16)
    h = jnp.dot(xb, w1b, preferred_element_type=jnp.float32) + b1
    h = jnp.maximum(h, 0.0).astype(jnp.bfloat16)
    h = jnp.dot(h, w2b, preferred_element_type=jnp.float32) + b2
    ah = ALPHA * h
    z = h
    for _ in range(K_PROP):
        z = (1.0 - ALPHA) * jnp.dot(ab, z.astype(jnp.bfloat16),
                                    preferred_element_type=jnp.float32) + ah
    return jax.nn.log_softmax(z, axis=1)


def gcn_normalize(adj_binary):
    # A_hat = D^{-1/2} (A + I) D^{-1/2}
    n = adj_binary.shape[0]
    a = adj_binary + jnp.eye(n, dtype=adj_binary.dtype)
    deg = jnp.sum(a, axis=1)
    d_inv_sqrt = jnp.where(deg > 0, 1.0 / jnp.sqrt(deg), 0.0)
    return a * d_inv_sqrt[:, None] * d_inv_sqrt[None, :]


if __name__ == "__main__":
    N, F_IN, HIDDEN, OUT = 128, 32, 64, 16

    key = jax.random.PRNGKey(0)
    kx, ka, kw1, kb1, kw2, kb2 = jax.random.split(key, 6)

    # Node features.
    x = jax.random.normal(kx, (N, F_IN), dtype=jnp.float32)

    # Random symmetric graph, GCN-normalized (stand-in for gcn_norm_ours(adj_t)).
    a_rand = jax.random.uniform(ka, (N, N))
    a_bin = (a_rand < 0.05).astype(jnp.float32)
    a_sym = jnp.maximum(a_bin, a_bin.T)
    adj = gcn_normalize(a_sym)

    # Deterministic PyTorch-Linear-style init: U(-1/sqrt(fan_in), 1/sqrt(fan_in)).
    bound1 = 1.0 / math.sqrt(F_IN)
    w1 = jax.random.uniform(kw1, (F_IN, HIDDEN), minval=-bound1, maxval=bound1,
                            dtype=jnp.float32)
    b1 = jax.random.uniform(kb1, (1, HIDDEN), minval=-bound1, maxval=bound1,
                            dtype=jnp.float32)
    bound2 = 1.0 / math.sqrt(HIDDEN)
    w2 = jax.random.uniform(kw2, (HIDDEN, OUT), minval=-bound2, maxval=bound2,
                            dtype=jnp.float32)
    b2 = jax.random.uniform(kb2, (1, OUT), minval=-bound2, maxval=bound2,
                            dtype=jnp.float32)

    ref_bf = reference_forward_bf16(x, adj, w1, b1, w2, b2)
    ref_f32 = reference_forward_f32(x, adj, w1, b1, w2, b2)

    # Path A: fused, adjacency resident in VMEM.
    out = appnp_concat_forward(x, adj, w1, b1, w2, b2)
    out = jax.block_until_ready(out)
    assert out.shape == (N, OUT)
    # Tight check vs a reference using the same bf16-operand / f32-accumulate math.
    assert jnp.allclose(out, ref_bf, atol=2e-3, rtol=2e-3), "mismatch vs bf16 ref"
    # Loose sanity check vs full-f32 semantics (bf16 rounding compounds over K=10).
    assert jnp.allclose(out, ref_f32, atol=2e-1, rtol=5e-2), "mismatch vs f32 ref"

    # Path B: row-tiled streaming variant (used automatically for large N / v7x);
    # exercised here with a small tile to verify it compiles and matches.
    out_t = appnp_concat_forward(x, adj, w1, b1, w2, b2,
                                 force_tiled=True, block_rows=64)
    out_t = jax.block_until_ready(out_t)
    assert out_t.shape == (N, OUT)
    assert jnp.allclose(out_t, ref_bf, atol=2e-3, rtol=2e-3), "tiled path mismatch"

    # TODO(synk): the cached spectral embedding from __init__ is unused in
    # forward() and is intentionally not implemented.
    print("KERNEL_OK")
</pallas_src>

<mosaic_0001>
module attributes {stable_mosaic.version = 11 : i64} {
  func.func @_appnp_fused_kernel(%arg0: i32, %arg1: memref<128x32xbf16, #tpu.memory_space<vmem>>, %arg2: memref<128x128xbf16, #tpu.memory_space<vmem>>, %arg3: memref<32x64xbf16, #tpu.memory_space<vmem>>, %arg4: memref<1x64xf32, #tpu.memory_space<vmem>>, %arg5: memref<64x128xbf16, #tpu.memory_space<vmem>>, %arg6: memref<1x128xf32, #tpu.memory_space<vmem>>, %arg7: memref<128x128xf32, #tpu.memory_space<vmem>>) attributes {dimension_semantics = [#tpu.dimension_semantics<arbitrary>], iteration_bounds = array<i64: 1>, scalar_prefetch = 0 : i64, scratch_operands = 0 : i64, tpu.core_type = #tpu.core_type<tc>, window_params = [{pipeline_mode = #tpu.pipeline_mode<synchronous>, transform_indices = @transform_0, window_bounds = array<i64: 128, 32>}, {pipeline_mode = #tpu.pipeline_mode<synchronous>, transform_indices = @transform_1, window_bounds = array<i64: 128, 128>}, {pipeline_mode = #tpu.pipeline_mode<synchronous>, transform_indices = @transform_2, window_bounds = array<i64: 32, 64>}, {pipeline_mode = #tpu.pipeline_mode<synchronous>, transform_indices = @transform_3, window_bounds = array<i64: 1, 64>}, {pipeline_mode = #tpu.pipeline_mode<synchronous>, transform_indices = @transform_4, window_bounds = array<i64: 64, 128>}, {pipeline_mode = #tpu.pipeline_mode<synchronous>, transform_indices = @transform_5, window_bounds = array<i64: 1, 128>}, {pipeline_mode = #tpu.pipeline_mode<synchronous>, transform_indices = @transform_6, window_bounds = array<i64: 128, 128>}]} {
    %c0 = arith.constant 0 : index
    %c0_0 = arith.constant 0 : index
    %0 = vector.load %arg1[%c0, %c0_0] : memref<128x32xbf16, #tpu.memory_space<vmem>>, vector<128x32xbf16>
    %c0_1 = arith.constant 0 : index
    %c0_2 = arith.constant 0 : index
    %1 = vector.load %arg3[%c0_1, %c0_2] : memref<32x64xbf16, #tpu.memory_space<vmem>>, vector<32x64xbf16>
    %cst = arith.constant dense<0.000000e+00> : vector<128x64xf32>
    %2 = tpu.matmul %0, %1, %cst {dimension_numbers = #tpu.dot_dimension_numbers<[1], [0], [0], [1], [0, 0, 1, 1], [], []>} : vector<128x32xbf16>, vector<32x64xbf16>, vector<128x64xf32> -> vector<128x64xf32>
    %c0_3 = arith.constant 0 : index
    %c0_4 = arith.constant 0 : index
    %3 = vector.load %arg4[%c0_3, %c0_4] : memref<1x64xf32, #tpu.memory_space<vmem>>, vector<1x64xf32>
    %4 = vector.broadcast %3 : vector<1x64xf32> to vector<128x64xf32>
    %5 = arith.addf %2, %4 : vector<128x64xf32>
    %cst_5 = arith.constant 0.000000e+00 : f32
    %6 = vector.broadcast %cst_5 : f32 to vector<128x64xf32>
    %7 = arith.maximumf %5, %6 : vector<128x64xf32>
    %8 = arith.truncf %7 : vector<128x64xf32> to vector<128x64xbf16>
    %c0_6 = arith.constant 0 : index
    %c0_7 = arith.constant 0 : index
    %9 = vector.load %arg5[%c0_6, %c0_7] : memref<64x128xbf16, #tpu.memory_space<vmem>>, vector<64x128xbf16>
    %cst_8 = arith.constant dense<0.000000e+00> : vector<128x128xf32>
    %10 = tpu.matmul %8, %9, %cst_8 {dimension_numbers = #tpu.dot_dimension_numbers<[1], [0], [0], [1], [0, 0, 1, 1], [], []>} : vector<128x64xbf16>, vector<64x128xbf16>, vector<128x128xf32> -> vector<128x128xf32>
    %c0_9 = arith.constant 0 : index
    %c0_10 = arith.constant 0 : index
    %11 = vector.load %arg6[%c0_9, %c0_10] : memref<1x128xf32, #tpu.memory_space<vmem>>, vector<1x128xf32>
    %12 = vector.broadcast %11 : vector<1x128xf32> to vector<128x128xf32>
    %13 = arith.addf %10, %12 : vector<128x128xf32>
    %cst_11 = arith.constant 1.000000e-01 : f32
    %14 = vector.broadcast %cst_11 : f32 to vector<128x128xf32>
    %15 = arith.mulf %14, %13 : vector<128x128xf32>
    %c0_12 = arith.constant 0 : index
    %c0_13 = arith.constant 0 : index
    %16 = vector.load %arg2[%c0_12, %c0_13] : memref<128x128xbf16, #tpu.memory_space<vmem>>, vector<128x128xbf16>
    %17 = arith.truncf %13 : vector<128x128xf32> to vector<128x128xbf16>
    %cst_14 = arith.constant dense<0.000000e+00> : vector<128x128xf32>
    %18 = tpu.matmul %16, %17, %cst_14 {dimension_numbers = #tpu.dot_dimension_numbers<[1], [0], [0], [1], [0, 0, 1, 1], [], []>} : vector<128x128xbf16>, vector<128x128xbf16>, vector<128x128xf32> -> vector<128x128xf32>
    %cst_15 = arith.constant 0.899999976 : f32
    %19 = vector.broadcast %cst_15 : f32 to vector<128x128xf32>
    %20 = arith.mulf %19, %18 : vector<128x128xf32>
    %21 = arith.addf %20, %15 : vector<128x128xf32>
    %22 = arith.truncf %21 : vector<128x128xf32> to vector<128x128xbf16>
    %cst_16 = arith.constant dense<0.000000e+00> : vector<128x128xf32>
    %23 = tpu.matmul %16, %22, %cst_16 {dimension_numbers = #tpu.dot_dimension_numbers<[1], [0], [0], [1], [0, 0, 1, 1], [], []>} : vector<128x128xbf16>, vector<128x128xbf16>, vector<128x128xf32> -> vector<128x128xf32>
    %cst_17 = arith.constant 0.899999976 : f32
    %24 = vector.broadcast %cst_17 : f32 to vector<128x128xf32>
    %25 = arith.mulf %24, %23 : vector<128x128xf32>
    %26 = arith.addf %25, %15 : vector<128x128xf32>
    %27 = arith.truncf %26 : vector<128x128xf32> to vector<128x128xbf16>
    %cst_18 = arith.constant dense<0.000000e+00> : vector<128x128xf32>
    %28 = tpu.matmul %16, %27, %cst_18 {dimension_numbers = #tpu.dot_dimension_numbers<[1], [0], [0], [1], [0, 0, 1, 1], [], []>} : vector<128x128xbf16>, vector<128x128xbf16>, vector<128x128xf32> -> vector<128x128xf32>
    %cst_19 = arith.constant 0.899999976 : f32
    %29 = vector.broadcast %cst_19 : f32 to vector<128x128xf32>
    %30 = arith.mulf %29, %28 : vector<128x128xf32>
    %31 = arith.addf %30, %15 : vector<128x128xf32>
    %32 = arith.truncf %31 : vector<128x128xf32> to vector<128x128xbf16>
    %cst_20 = arith.constant dense<0.000000e+00> : vector<128x128xf32>
    %33 = tpu.matmul %16, %32, %cst_20 {dimension_numbers = #tpu.dot_dimension_numbers<[1], [0], [0], [1], [0, 0, 1, 1], [], []>} : vector<128x128xbf16>, vector<128x128xbf16>, vector<128x128xf32> -> vector<128x128xf32>
    %cst_21 = arith.constant 0.899999976 : f32
    %34 = vector.broadcast %cst_21 : f32 to vector<128x128xf32>
    %35 = arith.mulf %34, %33 : vector<128x128xf32>
    %36 = arith.addf %35, %15 : vector<128x128xf32>
    %37 = arith.truncf %36 : vector<128x128xf32> to vector<128x128xbf16>
    %cst_22 = arith.constant dense<0.000000e+00> : vector<128x128xf32>
    %38 = tpu.matmul %16, %37, %cst_22 {dimension_numbers = #tpu.dot_dimension_numbers<[1], [0], [0], [1], [0, 0, 1, 1], [], []>} : vector<128x128xbf16>, vector<128x128xbf16>, vector<128x128xf32> -> vector<128x128xf32>
    %cst_23 = arith.constant 0.899999976 : f32
    %39 = vector.broadcast %cst_23 : f32 to vector<128x128xf32>
    %40 = arith.mulf %39, %38 : vector<128x128xf32>
    %41 = arith.addf %40, %15 : vector<128x128xf32>
    %42 = arith.truncf %41 : vector<128x128xf32> to vector<128x128xbf16>
    %cst_24 = arith.constant dense<0.000000e+00> : vector<128x128xf32>
    %43 = tpu.matmul %16, %42, %cst_24 {dimension_numbers = #tpu.dot_dimension_numbers<[1], [0], [0], [1], [0, 0, 1, 1], [], []>} : vector<128x128xbf16>, vector<128x128xbf16>, vector<128x128xf32> -> vector<128x128xf32>
    %cst_25 = arith.constant 0.899999976 : f32
    %44 = vector.broadcast %cst_25 : f32 to vector<128x128xf32>
    %45 = arith.mulf %44, %43 : vector<128x128xf32>
    %46 = arith.addf %45, %15 : vector<128x128xf32>
    %47 = arith.truncf %46 : vector<128x128xf32> to vector<128x128xbf16>
    %cst_26 = arith.constant dense<0.000000e+00> : vector<128x128xf32>
    %48 = tpu.matmul %16, %47, %cst_26 {dimension_numbers = #tpu.dot_dimension_numbers<[1], [0], [0], [1], [0, 0, 1, 1], [], []>} : vector<128x128xbf16>, vector<128x128xbf16>, vector<128x128xf32> -> vector<128x128xf32>
    %cst_27 = arith.constant 0.899999976 : f32
    %49 = vector.broadcast %cst_27 : f32 to vector<128x128xf32>
    %50 = arith.mulf %49, %48 : vector<128x128xf32>
    %51 = arith.addf %50, %15 : vector<128x128xf32>
    %52 = arith.truncf %51 : vector<128x128xf32> to vector<128x128xbf16>
    %cst_28 = arith.constant dense<0.000000e+00> : vector<128x128xf32>
    %53 = tpu.matmul %16, %52, %cst_28 {dimension_numbers = #tpu.dot_dimension_numbers<[1], [0], [0], [1], [0, 0, 1, 1], [], []>} : vector<128x128xbf16>, vector<128x128xbf16>, vector<128x128xf32> -> vector<128x128xf32>
    %cst_29 = arith.constant 0.899999976 : f32
    %54 = vector.broadcast %cst_29 : f32 to vector<128x128xf32>
    %55 = arith.mulf %54, %53 : vector<128x128xf32>
    %56 = arith.addf %55, %15 : vector<128x128xf32>
    %57 = arith.truncf %56 : vector<128x128xf32> to vector<128x128xbf16>
    %cst_30 = arith.constant dense<0.000000e+00> : vector<128x128xf32>
    %58 = tpu.matmul %16, %57, %cst_30 {dimension_numbers = #tpu.dot_dimension_numbers<[1], [0], [0], [1], [0, 0, 1, 1], [], []>} : vector<128x128xbf16>, vector<128x128xbf16>, vector<128x128xf32> -> vector<128x128xf32>
    %cst_31 = arith.constant 0.899999976 : f32
    %59 = vector.broadcast %cst_31 : f32 to vector<128x128xf32>
    %60 = arith.mulf %59, %58 : vector<128x128xf32>
    %61 = arith.addf %60, %15 : vector<128x128xf32>
    %62 = arith.truncf %61 : vector<128x128xf32> to vector<128x128xbf16>
    %cst_32 = arith.constant dense<0.000000e+00> : vector<128x128xf32>
    %63 = tpu.matmul %16, %62, %cst_32 {dimension_numbers = #tpu.dot_dimension_numbers<[1], [0], [0], [1], [0, 0, 1, 1], [], []>} : vector<128x128xbf16>, vector<128x128xbf16>, vector<128x128xf32> -> vector<128x128xf32>
    %cst_33 = arith.constant 0.899999976 : f32
    %64 = vector.broadcast %cst_33 : f32 to vector<128x128xf32>
    %65 = arith.mulf %64, %63 : vector<128x128xf32>
    %66 = arith.addf %65, %15 : vector<128x128xf32>
    %67 = tpu.iota {dimensions = array<i32: 1>} : vector<128x128xi32>
    %c16_i32 = arith.constant 16 : i32
    %68 = vector.broadcast %c16_i32 : i32 to vector<128x128xi32>
    %69 = arith.cmpi slt, %67, %68 : vector<128x128xi32>
    %cst_34 = arith.constant -1.000000e+30 : f32
    %70 = vector.broadcast %cst_34 : f32 to vector<128x128xf32>
    %71 = arith.select %69, %66, %70 : vector<128x128xi1>, vector<128x128xf32>
    %cst_35 = arith.constant dense<0xFF800000> : vector<128xf32>
    %72 = vector.multi_reduction <maximumf>, %71, %cst_35 [1] : vector<128x128xf32> to vector<128xf32>
    %73 = vector.shape_cast %72 : vector<128xf32> to vector<128x1xf32>
    %74 = vector.broadcast %73 : vector<128x1xf32> to vector<128x128xf32>
    %75 = arith.subf %66, %74 : vector<128x128xf32>
    %cst_36 = arith.constant -1.000000e+30 : f32
    %76 = vector.broadcast %cst_36 : f32 to vector<128x128xf32>
    %77 = arith.select %69, %75, %76 : vector<128x128xi1>, vector<128x128xf32>
    %78 = math.exp %77 : vector<128x128xf32>
    %cst_37 = arith.constant dense<0.000000e+00> : vector<128xf32>
    %79 = vector.multi_reduction <add>, %78, %cst_37 [1] : vector<128x128xf32> to vector<128xf32>
    %80 = vector.shape_cast %79 : vector<128xf32> to vector<128x1xf32>
    %81 = math.log %80 : vector<128x1xf32>
    %82 = vector.broadcast %81 : vector<128x1xf32> to vector<128x128xf32>
    %83 = arith.subf %75, %82 : vector<128x128xf32>
    %c0_38 = arith.constant 0 : index
    %c0_39 = arith.constant 0 : index
    %84 = vector.load %arg7[%c0_38, %c0_39] : memref<128x128xf32, #tpu.memory_space<vmem>>, vector<128x128xf32>
    tpu.vector_store %arg7[%c0_38, %c0_39], %83 {strides = array<i32>} : memref<128x128xf32, #tpu.memory_space<vmem>>, vector<128x128xf32>,
    return
  }
  func.func @transform_0(%arg0: i32) -> (i32, i32) {
    %c0_i32 = arith.constant 0 : i32
    %c0_i32_0 = arith.constant 0 : i32
    %c0_i32_1 = arith.constant 0 : i32
    return %c0_i32, %c0_i32_0 : i32, i32
  }
  func.func @transform_1(%arg0: i32) -> (i32, i32) {
    %c0_i32 = arith.constant 0 : i32
    %c0_i32_0 = arith.constant 0 : i32
    %c0_i32_1 = arith.constant 0 : i32
    return %c0_i32, %c0_i32_0 : i32, i32
  }
  func.func @transform_2(%arg0: i32) -> (i32, i32) {
    %c0_i32 = arith.constant 0 : i32
    %c0_i32_0 = arith.constant 0 : i32
    %c0_i32_1 = arith.constant 0 : i32
    return %c0_i32, %c0_i32_0 : i32, i32
  }
  func.func @transform_3(%arg0: i32) -> (i32, i32) {
    %c0_i32 = arith.constant 0 : i32
    %c0_i32_0 = arith.constant 0 : i32
    %c0_i32_1 = arith.constant 0 : i32
    return %c0_i32, %c0_i32_0 : i32, i32
  }
  func.func @transform_4(%arg0: i32) -> (i32, i32) {
    %c0_i32 = arith.constant 0 : i32
    %c0_i32_0 = arith.constant 0 : i32
    %c0_i32_1 = arith.constant 0 : i32
    return %c0_i32, %c0_i32_0 : i32, i32
  }
  func.func @transform_5(%arg0: i32) -> (i32, i32) {
    %c0_i32 = arith.constant 0 : i32
    %c0_i32_0 = arith.constant 0 : i32
    %c0_i32_1 = arith.constant 0 : i32
    return %c0_i32, %c0_i32_0 : i32, i32
  }
  func.func @transform_6(%arg0: i32) -> (i32, i32) {
    %c0_i32 = arith.constant 0 : i32
    %c0_i32_0 = arith.constant 0 : i32
    %c0_i32_1 = arith.constant 0 : i32
    return %c0_i32, %c0_i32_0 : i32, i32
  }
}

</mosaic_0001>

<bundles_post_ra>
// kernel: tpu_custom_call.1
= control target key start
LH: loop header
LB: loop body
LE: loop exit
PB: predicated region body
PF: predicated region fallthrough
CT: control target
= control target key end

     0   :  { %11 = vsyncpa [#allocation3], 0  ;;  %s3761_s0 = inlined_call_operand.hbm [shape: bf16[128,32], index: 0, kind: input, shape index: {}]   ;;  %s3762_s1 = inlined_call_operand.hbm [shape: bf16[128,128], index: 1, kind: input, shape index: {}]   ;;  %s3763_s2 = inlined_call_operand.hbm [shape: bf16[32,64], index: 2, kind: input, shape index: {}]   ;;  %s3764_s3 = inlined_call_operand.hbm [shape: f32[1,64], index: 3, kind: input, shape index: {}]   ;;  %s3765_s4 = inlined_call_operand.hbm [shape: bf16[64,128], index: 4, kind: input, shape index: {}]   ;;  %s3766_s5 = inlined_call_operand.hbm [shape: f32[1,128], index: 5, kind: input, shape index: {}]   ;;  %s3767_s6 = inlined_call_operand.hbm [shape: f32[128,128], index: 6, kind: output, shape index: {}]  }
   0x1   :  { %12 = vsyncpa [#allocation6], 0 }
   0x2   :  { %13 = vsyncpa [#allocation9], 0 }
   0x3   :  { %14 = vsyncpa [#allocation12], 0 }
   0x4   :  { %15 = vsyncpa [#allocation4], 0  ;;  %s3025_s21 = smov [#allocation5]   ;;  %s3026_s23 = smov [#allocation8]  }
   0x5   :  { %s33_s22 = sshll.u32 %s3025_s21, 4  ;;  %s58_s24 = sshll.u32 %s3026_s23, 4  ;;  %s34_s22 = int_to_ptr.vmem [resolvable:$true] %s33_s22  ;;  %s3071_s24 = int_to_ptr.vmem [resolvable:$true] %s58_s24 }
   0x6   :  { %s2861_s27 = scalar_lea.hbm %s3762_s1, 1024 }
   0x7   :  { %p2862_p0 = scmp.ne.s32.totalorder %s3762_s1, %s2861_s27  ;;  %p2865_p1 = scmp.lt.u32.totalorder %s2861_s27, %s3762_s1 }
   0x9   :  { %p2867_p2 = pnand %p2865_p1, %p2862_p0 }
   0xb   :  { %2870 = shalt.err (!%p2867_p2)
}
   0xc   :  { %s2871_s8 = scalar_lea.vmem %s34_s22, 1024  ;;  %p2876_p4 = scmp.lt.s32.totalorder %s34_s22, %s34_s22 }
   0xd   :  { %p2872_p3 = scmp.ne.s32.totalorder %s34_s22, %s2871_s8  ;;  %p2877_p5 = scmp.lt.s32.totalorder %s2871_s8, %s2871_s8 }
   0xf   :  { %p2878_p6 = por %p2877_p5, %p2876_p4 }
  0x11   :  { %p2879_p7 = pnand %p2878_p6, %p2872_p3 }
  0x13   :  { %2882 = shalt.err (!%p2879_p7)
}
  0x14   :  { %s3027_s9 = smov 64   ;;  %s3028_s10 = smov 4  }
  0x15   :  { %39 = dma.hbm_to_vmem [thread:$0]  %s3762_s1, 1024, %s34_s22, [#allocation6], %s3027_s9, %s3027_s9, %s3028_s10  }
  0x16   :  { %s2883_s15 = scalar_lea.hbm %s3764_s3, 16 }
  0x17   :  { %p2884_p8 = scmp.ne.s32.totalorder %s3764_s3, %s2883_s15  ;;  %p2887_p9 = scmp.lt.u32.totalorder %s2883_s15, %s3764_s3 }
  0x19   :  { %p2889_p10 = pnand %p2887_p9, %p2884_p8 }
  0x1b   :  { %2892 = shalt.err (!%p2889_p10)
}
  0x1c   :  { %s2893_s20 = scalar_lea.vmem %s3071_s24, 16  ;;  %s2897_s1 = scalar_lea.vmem %s3071_s24, 32 }
  0x1d   :  { %p2894_p11 = scmp.ne.s32.totalorder %s3071_s24, %s2893_s20  ;;  %p2898_p12 = scmp.lt.s32.totalorder %s3071_s24, %s3071_s24 }
  0x1e   :  { %p2899_p13 = scmp.lt.s32.totalorder %s2897_s1, %s2893_s20 }
  0x20   :  { %p2900_p0 = por %p2899_p13, %p2898_p12 }
  0x22   :  { %p2901_p1 = pnand %p2900_p0, %p2894_p11 }
  0x24   :  { %2904 = shalt.err (!%p2901_p1)
}
  0x25   :  { %61 = dma.hbm_to_vmem [thread:$0]  %s3764_s3, 16, %s3071_s24, [#allocation9]  }
  0x26   :  { %s3029_s23 = smov [#allocation2]   ;;  %s3030_s26 = smov [#allocation7]  }
  0x27   :  { %s21_s25 = sshll.u32 %s3029_s23, 4  ;;  %s45_s27 = sshll.u32 %s3030_s26, 4  ;;  %s22_s25 = int_to_ptr.vmem [resolvable:$true] %s21_s25  ;;  %s3106_s27 = int_to_ptr.vmem [resolvable:$true] %s45_s27 }
  0x28   :  { %s2905_s30 = scalar_lea.hbm %s3761_s0, 1024 }
  0x29   :  { %p2906_p2 = scmp.ne.s32.totalorder %s3761_s0, %s2905_s30  ;;  %p2909_p3 = scmp.lt.u32.totalorder %s2905_s30, %s3761_s0 }
  0x2b   :  { %p2911_p4 = pnand %p2909_p3, %p2906_p2 }
  0x2d   :  { %2914 = shalt.err (!%p2911_p4)
}
  0x2e   :  { %s2915_s3 = scalar_lea.vmem %s22_s25, 1024  ;;  %p2920_p6 = scmp.lt.s32.totalorder %s22_s25, %s22_s25 }
  0x2f   :  { %p2916_p5 = scmp.ne.s32.totalorder %s22_s25, %s2915_s3  ;;  %p2921_p7 = scmp.lt.s32.totalorder %s2915_s3, %s2915_s3 }
  0x31   :  { %p2922_p8 = por %p2921_p7, %p2920_p6 }
  0x33   :  { %p2923_p9 = pnand %p2922_p8, %p2916_p5 }
  0x35   :  { %2926 = shalt.err (!%p2923_p9)
}
  0x36   :  { %27 = dma.hbm_to_vmem [thread:$0]  %s3761_s0, 1024, %s22_s25, [#allocation3], %s3027_s9, %s3027_s9, %s3028_s10  }
  0x37   :  { %s2927_s16 = scalar_lea.hbm %s3763_s2, 256 }
  0x38   :  { %p2928_p10 = scmp.ne.s32.totalorder %s3763_s2, %s2927_s16  ;;  %p2931_p11 = scmp.lt.u32.totalorder %s2927_s16, %s3763_s2 }
  0x3a   :  { %p2933_p12 = pnand %p2931_p11, %p2928_p10 }
  0x3c   :  { %2936 = shalt.err (!%p2933_p12)
}
  0x3d   :  { %s2937_s1 = scalar_lea.vmem %s3106_s27, 256  ;;  %p2942_p0 = scmp.lt.s32.totalorder %s3106_s27, %s3106_s27 }
  0x3e   :  { %p2938_p13 = scmp.ne.s32.totalorder %s3106_s27, %s2937_s1  ;;  %p2943_p1 = scmp.lt.s32.totalorder %s2937_s1, %s2937_s1 }
  0x40   :  { %p2944_p2 = por %p2943_p1, %p2942_p0 }
  0x42   :  { %p2945_p3 = pnand %p2944_p2, %p2938_p13 }
  0x44   :  { %2948 = shalt.err (!%p2945_p3)
}
  0x45   :  { %51 = dma.hbm_to_vmem [thread:$0]  %s3763_s2, 256, %s3106_s27, [#allocation6], %s3027_s9, %s3027_s9, %s3028_s10  }
  0x46   :  { %s3031_s22 = smov [#allocation10]   ;;  %s3032_s25 = smov [#allocation11]  }
  0x47   :  { %s67_s23 = sshll.u32 %s3031_s22, 4  ;;  %s80_s26 = sshll.u32 %s3032_s25, 4  ;;  %s68_s23 = int_to_ptr.vmem [resolvable:$true] %s67_s23  ;;  %s81_s26 = int_to_ptr.vmem [resolvable:$true] %s80_s26 }
  0x48   :  { %s2949_s30 = scalar_lea.hbm %s3765_s4, 512 }
  0x49   :  { %p2950_p4 = scmp.ne.s32.totalorder %s3765_s4, %s2949_s30  ;;  %p2953_p5 = scmp.lt.u32.totalorder %s2949_s30, %s3765_s4 }
  0x4b   :  { %p2955_p6 = pnand %p2953_p5, %p2950_p4 }
  0x4d   :  { %2958 = shalt.err (!%p2955_p6)
}
  0x4e   :  { %s2959_s2 = scalar_lea.vmem %s68_s23, 512  ;;  %p2964_p8 = scmp.lt.s32.totalorder %s68_s23, %s68_s23 }
  0x4f   :  { %p2960_p7 = scmp.ne.s32.totalorder %s68_s23, %s2959_s2  ;;  %p2965_p9 = scmp.lt.s32.totalorder %s2959_s2, %s2959_s2 }
  0x51   :  { %p2966_p10 = por %p2965_p9, %p2964_p8 }
  0x53   :  { %p2967_p11 = pnand %p2966_p10, %p2960_p7 }
  0x55   :  { %2970 = shalt.err (!%p2967_p11)
}
  0x56   :  { %73 = dma.hbm_to_vmem [thread:$0]  %s3765_s4, 512, %s68_s23, [#allocation9], %s3027_s9, %s3027_s9, %s3028_s10  }
  0x57   :  { %s2971_s14 = scalar_lea.hbm %s3766_s5, 16 }
  0x58   :  { %p2972_p12 = scmp.ne.s32.totalorder %s3766_s5, %s2971_s14  ;;  %p2975_p13 = scmp.lt.u32.totalorder %s2971_s14, %s3766_s5 }
  0x5a   :  { %p2977_p0 = pnand %p2975_p13, %p2972_p12 }
  0x5c   :  { %2980 = shalt.err (!%p2977_p0)
}
  0x5d   :  { %s2981_s19 = scalar_lea.vmem %s81_s26, 16  ;;  %s2985_s20 = scalar_lea.vmem %s81_s26, 32 }
  0x5e   :  { %p2982_p1 = scmp.ne.s32.totalorder %s81_s26, %s2981_s19  ;;  %p2986_p2 = scmp.lt.s32.totalorder %s81_s26, %s81_s26 }
  0x5f   :  { %p2987_p3 = scmp.lt.s32.totalorder %s2985_s20, %s2981_s19 }
  0x61   :  { %p2988_p4 = por %p2987_p3, %p2986_p2 }
  0x63   :  { %p2989_p5 = pnand %p2988_p4, %p2982_p1 }
  0x65   :  { %2992 = shalt.err (!%p2989_p5)
}
  0x66   :  { %83 = dma.hbm_to_vmem [thread:$0]  %s3766_s5, 16, %s81_s26, [#allocation12]  }
  0x67   :  { %3015 = dma.done.wait [#allocation3], 1024  }
  0x68   :  { %3016 = vsyncadd [#allocation3], 4294966272 }
  0x69   :  { %3017 = dma.done.wait [#allocation6], 1280  }
  0x6a   :  { %3018 = vsyncadd [#allocation6], 4294966016 }
  0x6b   :  { %3019 = dma.done.wait [#allocation9], 528  }
  0x6c   :  { %3020 = vsyncadd [#allocation9], 4294966768 }
  0x6d   :  { %3021 = dma.done.wait [#allocation12], 16  }
  0x6e   :  { %3022 = vsyncadd [#allocation12], 4294967280  ;;  %v2767_v0 = vld [vmem:[#allocation7] sm:$0xff]   ;;  %v2768_v1 = vld [vmem:[#allocation7 + $0x8] sm:$0xff]   ;;  %vm182_vm0 = vcmask 261120   ;;  %vm367_vm1 = vcmask 523264  }
  0x6f   :  { %2392 = vmatprep.subr.bf16.mxu0 %v2767_v0  ;;  %v2769_v2 = vld [vmem:[#allocation2] sm:$0xff]   ;;  %v2770_v3 = vld [vmem:[#allocation2 + $0x8] sm:$0xff]   ;;  %v2771_v4 = vld [vmem:[#allocation2 + $0x10] sm:$0xff]   ;;  %s3033_s5 = smov [#allocation13]  }
  0x70   :  { %2393 = vmatpush3.bf16.msra.mxu0 %v2767_v0  ;;  %2396 = vmatprep.mubr.msk.bf16.mxu0 %vm182_vm0, %v2769_v2  ;;  %v2777_v5 = vld [vmem:[#allocation10] sm:$0xff]   ;;  %v2778_v6 = vld [vmem:[#allocation10 + $0x8] sm:$0xff]   ;;  %v2774_v9 = vld [vmem:[#allocation2 + $0x28] sm:$0xff]   ;;  %s2155_s10 = sshll.u32 %s3033_s5, 4  ;;  %s2156_s10 = int_to_ptr.vmem [resolvable:$true] %s2155_s10 }
  0x71   :  { %2394 = vmatprep.subr.bf16.mxu0 %v2768_v1  ;;  %v2772_v7 = vld [vmem:[#allocation2 + $0x18] sm:$0xff]   ;;  %2412 = vmatprep.subr.bf16.mxu1 %v2777_v5  ;;  %v2773_v8 = vld [vmem:[#allocation2 + $0x20] sm:$0xff]   ;;  %v2775_v10 = vld [vmem:[#allocation2 + $0x30] sm:$0xff]   ;;  %s2993_s1 = scalar_lea.vmem %s2156_s10, 2048  ;;  %p2998_p7 = scmp.lt.s32.totalorder %s2156_s10, %s2156_s10 }
  0x72   :  { %2413 = vmatpush3.bf16.msra.mxu1 %v2777_v5  ;;  %v2776_v11 = vld [vmem:[#allocation2 + $0x38] sm:$0xff]   ;;  %v2779_v12 = vld [vmem:[#allocation10 + $0x10] sm:$0xff]   ;;  %v2780_v13 = vld [vmem:[#allocation10 + $0x18] sm:$0xff]   ;;  %p2994_p6 = scmp.ne.s32.totalorder %s2156_s10, %s2993_s1  ;;  %p2999_p8 = scmp.lt.s32.totalorder %s2993_s1, %s2993_s1 }
  0x73   :  { %2414 = vmatprep.subr.bf16.mxu1 %v2778_v6  ;;  %v2170_v14 = vld [vmem:[#allocation8] ss:$0 sm:$0xff] }
  0x74   :  { %2395 = vmatpush3.bf16.msra.mxu0 %v2768_v1  ;;  %p3000_p9 = por %p2999_p8, %p2998_p7 }
  0x76   :  { %2415 = vmatpush3.bf16.msra.mxu1 %v2778_v6  ;;  %p3001_p10 = pnand %p3000_p9, %p2994_p6 }
  0x77   :  { %2397 = vmatmul.mubr.msk.bf16.vlgmr.msra.gmra.mrb[0].mxu0 %vm182_vm0, %v2770_v3  ;;  %2416 = vmatprep.subr.bf16.mxu1 %v2779_v12 }
  0x78   :  { %2400 = vmatprep.mubr.msk.bf16.mxu0 %vm182_vm0, %v2771_v4 }
  0x7a   :  { %2417 = vmatpush3.bf16.msra.mxu1 %v2779_v12 }
  0x7b   :  { %2418 = vmatprep.subr.bf16.mxu1 %v2780_v13 }
  0x7e   :  { %2419 = vmatpush3.bf16.msra.mxu1 %v2780_v13 }
  0x7f   :  { %2401 = vmatmul.mubr.msk.bf16.gmra.mrb[4].mxu0 %vm182_vm0, %v2772_v7  ;;  %v3186_v7 = vld [vmem:[#allocation5] sm:$0xff]  }
  0x80   :  { %2404 = vmatprep.mubr.msk.bf16.mxu0 %vm182_vm0, %v2773_v8 }
  0x87   :  { %2405 = vmatmul.mubr.msk.bf16.gmra.mrb[8].mxu0 %vm182_vm0, %v2774_v9  ;;  %v2189_v9 = vld [vmem:[#allocation11] ss:$0 sm:$0xff] }
  0x88   :  { %2408 = vmatprep.mubr.msk.bf16.mxu0 %vm182_vm0, %v2775_v10 }
  0x8f   :  { %2409 = vmatmul.mubr.msk.bf16.gmra.mrb[12].mxu0 %vm182_vm0, %v2776_v11 }
  0x90   :  { %2452 = vmatprep.mubr.bf16.mxu0 %v3186_v7 }
 0x14a   :  { %v2398_v15 = vpop.f32.mrb[0].mxu0 }
 0x14b   :  { %v250_v16 = vadd.f32 %v2398_v15, %v2170_v14  ;;  %v241_v17 = vpop.f32.mrb[1].mxu0 }
 0x14c   :  { %v242_v18 = vadd.f32 %v2170_v14, %v241_v17  ;;  %v2399_v19 = vpop.f32.mrb[2].mxu0 }
 0x14d   :  { %v253_v20 = vadd.f32 %v2399_v19, %v2170_v14  ;;  %v244_v21 = vpop.f32.mrb[3].mxu0  ;;  %v306_v23 = vmax.f32 %v250_v16, 0.0 }
 0x14e   :  { %v245_v22 = vadd.f32 %v2170_v14, %v244_v21  ;;  %v304_v25 = vmax.f32 %v242_v18, 0.0 }
 0x14f   :  { %v307_v24 = vmax.f32 %v253_v20, 0.0 }
 0x150   :  { %v305_v26 = vmax.f32 %v245_v22, 0.0 }
 0x151   :  { %v321_v27 = vpack.c.bf16 %v307_v24, %v306_v23 }
 0x152   :  { %v2402_v28 = vpop.f32.mrb[4].mxu0  ;;  %v320_v29 = vpack.c.bf16 %v305_v26, %v304_v25 }
 0x153   :  { %v266_v30 = vadd.f32 %v2402_v28, %v2170_v14  ;;  %v257_v31 = vpop.f32.mrb[5].mxu0 }
 0x154   :  { %v258_v32 = vadd.f32 %v2170_v14, %v257_v31  ;;  %v2403_v33 = vpop.f32.mrb[6].mxu0  ;;  %2420 = vmatprep.mubr.msk.bf16.mxu1 %vm367_vm1, %v320_v29 }
 0x155   :  { %v269_v34 = vadd.f32 %v2403_v33, %v2170_v14  ;;  %v260_v35 = vpop.f32.mrb[7].mxu0  ;;  %2421 = vmatmul.mubr.msk.bf16.vlgmr.msra.gmra.mrb[0].mxu1 %vm367_vm1, %v321_v27  ;;  %v310_v37 = vmax.f32 %v266_v30, 0.0 }
 0x156   :  { %v261_v36 = vadd.f32 %v2170_v14, %v260_v35  ;;  %v308_v39 = vmax.f32 %v258_v32, 0.0 }
 0x157   :  { %v311_v38 = vmax.f32 %v269_v34, 0.0 }
 0x158   :  { %v309_v40 = vmax.f32 %v261_v36, 0.0 }
 0x159   :  { %v323_v41 = vpack.c.bf16 %v311_v38, %v310_v37 }
 0x15a   :  { %v322_v42 = vpack.c.bf16 %v309_v40, %v308_v39  ;;  %v2406_v43 = vpop.f32.mrb[8].mxu0 }
 0x15b   :  { %v282_v44 = vadd.f32 %v2406_v43, %v2170_v14  ;;  %v273_v45 = vpop.f32.mrb[9].mxu0 }
 0x15c   :  { %v274_v46 = vadd.f32 %v2170_v14, %v273_v45  ;;  %v2407_v47 = vpop.f32.mrb[10].mxu0  ;;  %2424 = vmatprep.mubr.msk.bf16.mxu1 %vm367_vm1, %v322_v42 }
 0x15d   :  { %v285_v48 = vadd.f32 %v2407_v47, %v2170_v14  ;;  %v276_v49 = vpop.f32.mrb[11].mxu0  ;;  %2425 = vmatmul.mubr.msk.bf16.gmra.mrb[4].mxu1 %vm367_vm1, %v323_v41  ;;  %v314_v51 = vmax.f32 %v282_v44, 0.0 }
 0x15e   :  { %v277_v50 = vadd.f32 %v2170_v14, %v276_v49  ;;  %v312_v53 = vmax.f32 %v274_v46, 0.0  ;;  %v3238_v49 = vld [vmem:[#allocation5 + $0x8] sm:$0xff]  }
 0x15f   :  { %v315_v52 = vmax.f32 %v285_v48, 0.0 }
 0x160   :  { %v313_v54 = vmax.f32 %v277_v50, 0.0  ;;  %v3240_v50 = vld [vmem:[#allocation5 + $0x10] sm:$0xff]  }
 0x161   :  { %v325_v55 = vpack.c.bf16 %v315_v52, %v314_v51  ;;  %v3244_v51 = vld [vmem:[#allocation5 + $0x18] sm:$0xff]   ;;  %v3246_v52 = vld [vmem:[#allocation5 + $0x20] sm:$0xff]  }
 0x162   :  { %v324_v56 = vpack.c.bf16 %v313_v54, %v312_v53  ;;  %v2410_v57 = vpop.f32.mrb[12].mxu0  ;;  %v3250_v53 = vld [vmem:[#allocation5 + $0x28] sm:$0xff]   ;;  %v3252_v54 = vld [vmem:[#allocation5 + $0x30] sm:$0xff]  }
 0x163   :  { %v298_v58 = vadd.f32 %v2410_v57, %v2170_v14  ;;  %v289_v59 = vpop.f32.mrb[13].mxu0 }
 0x164   :  { %v290_v60 = vadd.f32 %v2170_v14, %v289_v59  ;;  %v2411_v61 = vpop.f32.mrb[14].mxu0  ;;  %2428 = vmatprep.mubr.msk.bf16.mxu1 %vm367_vm1, %v324_v56 }
 0x165   :  { %v301_v62 = vadd.f32 %v2411_v61, %v2170_v14  ;;  %v292_v63 = vpop.f32.mrb[15].mxu0  ;;  %2429 = vmatmul.mubr.msk.bf16.gmra.mrb[8].mxu1 %vm367_vm1, %v325_v55  ;;  %v318_v1 = vmax.f32 %v298_v58, 0.0  ;;  %v3256_v55 = vld [vmem:[#allocation5 + $0x38] sm:$0xff]  }
 0x166   :  { %v293_v0 = vadd.f32 %v2170_v14, %v292_v63  ;;  %v316_v3 = vmax.f32 %v290_v60, 0.0 }
 0x167   :  { %v319_v2 = vmax.f32 %v301_v62, 0.0 }
 0x168   :  { %v317_v4 = vmax.f32 %v293_v0, 0.0 }
 0x169   :  { %v327_v5 = vpack.c.bf16 %v319_v2, %v318_v1 }
 0x16a   :  { %v326_v6 = vpack.c.bf16 %v317_v4, %v316_v3 }
 0x16c   :  { %2432 = vmatprep.mubr.msk.bf16.mxu1 %vm367_vm1, %v326_v6 }
 0x16d   :  { %2433 = vmatmul.mubr.msk.bf16.gmra.mrb[12].mxu1 %vm367_vm1, %v327_v5 }
 0x16e   :  { %2484 = vmatprep.mubr.bf16.mxu1 %v3186_v7 }
 0x228   :  { %v2422_v8 = vpop.f32.mrb[0].mxu1 }
 0x229   :  { %v426_v10 = vpop.f32.mrb[1].mxu1  ;;  %v3190_v12 = vadd.f32 %v2422_v8, %v2189_v9 }
 0x22a   :  { %v2423_v11 = vpop.f32.mrb[2].mxu1  ;;  %v3194_v15 = vadd.f32 %v2189_v9, %v426_v10 }
 0x22b   :  { %v3192_v13 = vadd.f32 %v2423_v11, %v2189_v9  ;;  %v429_v14 = vpop.f32.mrb[3].mxu1  ;;  %v3261_v59 = vmul.f32 0.1, %v3190_v12 }
 0x22c   :  { %v3196_v16 = vadd.f32 %v2189_v9, %v429_v14  ;;  %v3267_v1 = vmul.f32 0.1, %v3194_v15 }
 0x22d   :  { %v522_v17 = vpack.c.bf16 %v3192_v13, %v3190_v12  ;;  %v3264_v62 = vmul.f32 0.1, %v3192_v13 }
 0x22e   :  { %v521_v18 = vpack.c.bf16 %v3196_v16, %v3194_v15  ;;  %v3270_v2 = vmul.f32 0.1, %v3196_v16 }
 0x230   :  { %v2426_v19 = vpop.f32.mrb[4].mxu1  ;;  %2436 = vmatprep.subr.bf16.mxu0 %v521_v18 }
 0x231   :  { %v442_v20 = vpop.f32.mrb[5].mxu1  ;;  %2437 = vmatpush3.bf16.msra.mxu0 %v521_v18  ;;  %v3202_v22 = vadd.f32 %v2426_v19, %v2189_v9 }
 0x232   :  { %v2427_v21 = vpop.f32.mrb[6].mxu1  ;;  %2438 = vmatprep.subr.bf16.mxu0 %v522_v17  ;;  %v3206_v25 = vadd.f32 %v2189_v9, %v442_v20 }
 0x233   :  { %v3204_v23 = vadd.f32 %v2427_v21, %v2189_v9  ;;  %v445_v24 = vpop.f32.mrb[7].mxu1  ;;  %v3277_v14 = vmul.f32 0.1, %v3202_v22 }
 0x234   :  { %v3208_v26 = vadd.f32 %v2189_v9, %v445_v24  ;;  %v3283_v20 = vmul.f32 0.1, %v3206_v25 }
 0x235   :  { %v524_v27 = vpack.c.bf16 %v3204_v23, %v3202_v22  ;;  %2439 = vmatpush3.bf16.msra.mxu0 %v522_v17  ;;  %v3280_v17 = vmul.f32 0.1, %v3204_v23 }
 0x236   :  { %v523_v28 = vpack.c.bf16 %v3208_v26, %v3206_v25  ;;  %v3286_v21 = vmul.f32 0.1, %v3208_v26 }
 0x238   :  { %v2430_v29 = vpop.f32.mrb[8].mxu1  ;;  %2440 = vmatprep.subr.bf16.mxu0 %v523_v28 }
 0x239   :  { %v458_v30 = vpop.f32.mrb[9].mxu1  ;;  %2441 = vmatpush3.bf16.msra.mxu0 %v523_v28  ;;  %v3214_v32 = vadd.f32 %v2430_v29, %v2189_v9 }
 0x23a   :  { %v2431_v31 = vpop.f32.mrb[10].mxu1  ;;  %2442 = vmatprep.subr.bf16.mxu0 %v524_v27  ;;  %v3218_v35 = vadd.f32 %v2189_v9, %v458_v30 }
 0x23b   :  { %v3216_v33 = vadd.f32 %v2431_v31, %v2189_v9  ;;  %v461_v34 = vpop.f32.mrb[11].mxu1 }
 0x23c   :  { %v3220_v36 = vadd.f32 %v2189_v9, %v461_v34 }
 0x23d   :  { %v526_v37 = vpack.c.bf16 %v3216_v33, %v3214_v32  ;;  %2443 = vmatpush3.bf16.msra.mxu0 %v524_v27 }
 0x23e   :  { %v525_v38 = vpack.c.bf16 %v3220_v36, %v3218_v35 }
 0x240   :  { %v2434_v39 = vpop.f32.mrb[12].mxu1  ;;  %2444 = vmatprep.subr.bf16.mxu0 %v525_v38 }
 0x241   :  { %v474_v40 = vpop.f32.mrb[13].mxu1  ;;  %2445 = vmatpush3.bf16.msra.mxu0 %v525_v38  ;;  %v3226_v42 = vadd.f32 %v2434_v39, %v2189_v9  ;;  %v3296_v39 = vmul.f32 0.1, %v3216_v33 }
 0x242   :  { %v2435_v41 = vpop.f32.mrb[14].mxu1  ;;  %2446 = vmatprep.subr.bf16.mxu0 %v526_v37  ;;  %v3230_v45 = vadd.f32 %v2189_v9, %v474_v40 }
 0x243   :  { %v3228_v43 = vadd.f32 %v2435_v41, %v2189_v9  ;;  %v477_v44 = vpop.f32.mrb[15].mxu1 }
 0x244   :  { %v3232_v46 = vadd.f32 %v2189_v9, %v477_v44  ;;  %v3299_v44 = vmul.f32 0.1, %v3218_v35 }
 0x245   :  { %v528_v47 = vpack.c.bf16 %v3228_v43, %v3226_v42  ;;  %2447 = vmatpush3.bf16.msra.mxu0 %v526_v37  ;;  %v3293_v37 = vmul.f32 0.1, %v3214_v32 }
 0x246   :  { %v527_v48 = vpack.c.bf16 %v3232_v46, %v3230_v45 }
 0x248   :  { %2448 = vmatprep.subr.bf16.mxu0 %v527_v48 }
 0x249   :  { %2449 = vmatpush3.bf16.msra.mxu0 %v527_v48 }
 0x24a   :  { %2450 = vmatprep.subr.bf16.mxu0 %v528_v47 }
 0x24d   :  { %2451 = vmatpush3.bf16.msra.mxu0 %v528_v47  ;;  %v3302_v47 = vmul.f32 0.1, %v3220_v36 }
 0x250   :  { %2453 = vmatmul.mubr.bf16.vlgmr.msra.gmra.mrb[16].mxu0 %v3238_v49 }
 0x251   :  { %2456 = vmatprep.mubr.bf16.mxu0 %v3240_v50 }
 0x258   :  { %2457 = vmatmul.mubr.bf16.gmra.mrb[20].mxu0 %v3244_v51 }
 0x259   :  { %2460 = vmatprep.mubr.bf16.mxu0 %v3246_v52 }
 0x260   :  { %2461 = vmatmul.mubr.bf16.gmra.mrb[24].mxu0 %v3250_v53 }
 0x261   :  { %2464 = vmatprep.mubr.bf16.mxu0 %v3252_v54 }
 0x268   :  { %2465 = vmatmul.mubr.bf16.gmra.mrb[28].mxu0 %v3256_v55 }
 0x269   :  { %2516 = vmatprep.mubr.bf16.mxu0 %v3186_v7 }
 0x323   :  { %v2454_v56 = vpop.f32.mrb[16].mxu0 }
 0x324   :  { %v676_v57 = vmul.f32 0.9, %v2454_v56  ;;  %v611_v58 = vpop.f32.mrb[17].mxu0 }
 0x325   :  { %v674_v60 = vmul.f32 0.9, %v611_v58  ;;  %v2455_v61 = vpop.f32.mrb[18].mxu0 }
 0x326   :  { %v677_v63 = vmul.f32 0.9, %v2455_v61  ;;  %v614_v0 = vpop.f32.mrb[19].mxu0  ;;  %v692_v4 = vadd.f32 %v676_v57, %v3261_v59 }
 0x327   :  { %v675_v3 = vmul.f32 0.9, %v614_v0  ;;  %v690_v6 = vadd.f32 %v674_v60, %v3267_v1  ;;  %v3309_v0 = vmul.f32 0.1, %v3226_v42 }
 0x328   :  { %v693_v5 = vadd.f32 %v677_v63, %v3264_v62 }
 0x329   :  { %v691_v8 = vadd.f32 %v675_v3, %v3270_v2 }
 0x32a   :  { %v707_v9 = vpack.c.bf16 %v693_v5, %v692_v4  ;;  %v3312_v4 = vmul.f32 0.1, %v3228_v43 }
 0x32b   :  { %v2458_v10 = vpop.f32.mrb[20].mxu0  ;;  %v706_v11 = vpack.c.bf16 %v691_v8, %v690_v6  ;;  %v3315_v8 = vmul.f32 0.1, %v3230_v45 }
 0x32c   :  { %v680_v12 = vmul.f32 0.9, %v2458_v10  ;;  %v627_v13 = vpop.f32.mrb[21].mxu0 }
 0x32d   :  { %v678_v15 = vmul.f32 0.9, %v627_v13  ;;  %v2459_v16 = vpop.f32.mrb[22].mxu0  ;;  %2468 = vmatprep.subr.bf16.mxu1 %v706_v11 }
 0x32e   :  { %v681_v18 = vmul.f32 0.9, %v2459_v16  ;;  %v630_v19 = vpop.f32.mrb[23].mxu0  ;;  %2469 = vmatpush3.bf16.msra.mxu1 %v706_v11  ;;  %v696_v22 = vadd.f32 %v680_v12, %v3277_v14 }
 0x32f   :  { %v679_v24 = vmul.f32 0.9, %v630_v19  ;;  %2470 = vmatprep.subr.bf16.mxu1 %v707_v9  ;;  %v694_v28 = vadd.f32 %v678_v15, %v3283_v20 }
 0x330   :  { %v697_v27 = vadd.f32 %v681_v18, %v3280_v17 }
 0x331   :  { %v695_v23 = vadd.f32 %v679_v24, %v3286_v21 }
 0x332   :  { %2471 = vmatpush3.bf16.msra.mxu1 %v707_v9  ;;  %v709_v29 = vpack.c.bf16 %v697_v27, %v696_v22  ;;  %v3318_v9 = vmul.f32 0.1, %v3232_v46 }
 0x333   :  { %v2462_v30 = vpop.f32.mrb[24].mxu0  ;;  %v708_v31 = vpack.c.bf16 %v695_v23, %v694_v28 }
 0x334   :  { %v684_v34 = vmul.f32 0.9, %v2462_v30  ;;  %v643_v25 = vpop.f32.mrb[25].mxu0 }
 0x335   :  { %v682_v26 = vmul.f32 0.9, %v643_v25  ;;  %v2463_v38 = vpop.f32.mrb[26].mxu0  ;;  %2472 = vmatprep.subr.bf16.mxu1 %v708_v31 }
 0x336   :  { %v685_v40 = vmul.f32 0.9, %v2463_v38  ;;  %v646_v41 = vpop.f32.mrb[27].mxu0  ;;  %2473 = vmatpush3.bf16.msra.mxu1 %v708_v31  ;;  %v700_v32 = vadd.f32 %v684_v34, %v3293_v37 }
 0x337   :  { %v683_v48 = vmul.f32 0.9, %v646_v41  ;;  %2474 = vmatprep.subr.bf16.mxu1 %v709_v29  ;;  %v698_v57 = vadd.f32 %v682_v26, %v3299_v44 }
 0x338   :  { %v701_v56 = vadd.f32 %v685_v40, %v3296_v39 }
 0x339   :  { %v699_v33 = vadd.f32 %v683_v48, %v3302_v47 }
 0x33a   :  { %2475 = vmatpush3.bf16.msra.mxu1 %v709_v29  ;;  %v711_v58 = vpack.c.bf16 %v701_v56, %v700_v32 }
 0x33b   :  { %v2466_v60 = vpop.f32.mrb[28].mxu0  ;;  %v710_v61 = vpack.c.bf16 %v699_v33, %v698_v57 }
 0x33c   :  { %v688_v63 = vmul.f32 0.9, %v2466_v60  ;;  %v659_v35 = vpop.f32.mrb[29].mxu0 }
 0x33d   :  { %v686_v36 = vmul.f32 0.9, %v659_v35  ;;  %v2467_v3 = vpop.f32.mrb[30].mxu0  ;;  %2476 = vmatprep.subr.bf16.mxu1 %v710_v61 }
 0x33e   :  { %v689_v5 = vmul.f32 0.9, %v2467_v3  ;;  %v662_v6 = vpop.f32.mrb[31].mxu0  ;;  %2477 = vmatpush3.bf16.msra.mxu1 %v710_v61  ;;  %v704_v42 = vadd.f32 %v688_v63, %v3309_v0 }
 0x33f   :  { %v687_v10 = vmul.f32 0.9, %v662_v6  ;;  %2478 = vmatprep.subr.bf16.mxu1 %v711_v58  ;;  %v702_v12 = vadd.f32 %v686_v36, %v3315_v8 }
 0x340   :  { %v705_v11 = vadd.f32 %v689_v5, %v3312_v4 }
 0x341   :  { %v703_v43 = vadd.f32 %v687_v10, %v3318_v9 }
 0x342   :  { %2479 = vmatpush3.bf16.msra.mxu1 %v711_v58  ;;  %v713_v13 = vpack.c.bf16 %v705_v11, %v704_v42 }
 0x343   :  { %v712_v15 = vpack.c.bf16 %v703_v43, %v702_v12 }
 0x345   :  { %2480 = vmatprep.subr.bf16.mxu1 %v712_v15 }
 0x346   :  { %2481 = vmatpush3.bf16.msra.mxu1 %v712_v15 }
 0x347   :  { %2482 = vmatprep.subr.bf16.mxu1 %v713_v13 }
 0x34a   :  { %2483 = vmatpush3.bf16.msra.mxu1 %v713_v13 }
 0x34d   :  { %2485 = vmatmul.mubr.bf16.vlgmr.msra.gmra.mrb[16].mxu1 %v3238_v49 }
 0x34e   :  { %2488 = vmatprep.mubr.bf16.mxu1 %v3240_v50 }
 0x355   :  { %2489 = vmatmul.mubr.bf16.gmra.mrb[20].mxu1 %v3244_v51 }
 0x356   :  { %2492 = vmatprep.mubr.bf16.mxu1 %v3246_v52 }
 0x35d   :  { %2493 = vmatmul.mubr.bf16.gmra.mrb[24].mxu1 %v3250_v53 }
 0x35e   :  { %2496 = vmatprep.mubr.bf16.mxu1 %v3252_v54 }
 0x365   :  { %2497 = vmatmul.mubr.bf16.gmra.mrb[28].mxu1 %v3256_v55 }
 0x366   :  { %2548 = vmatprep.mubr.bf16.mxu1 %v3186_v7 }
 0x420   :  { %v2486_v45 = vpop.f32.mrb[16].mxu1 }
 0x421   :  { %v813_v46 = vmul.f32 0.9, %v2486_v45  ;;  %v748_v16 = vpop.f32.mrb[17].mxu1 }
 0x422   :  { %v811_v18 = vmul.f32 0.9, %v748_v16  ;;  %v2487_v19 = vpop.f32.mrb[18].mxu1 }
 0x423   :  { %v814_v24 = vmul.f32 0.9, %v2487_v19  ;;  %v751_v22 = vpop.f32.mrb[19].mxu1  ;;  %v829_v28 = vadd.f32 %v813_v46, %v3261_v59 }
 0x424   :  { %v812_v27 = vmul.f32 0.9, %v751_v22  ;;  %v827_v29 = vadd.f32 %v811_v18, %v3267_v1 }
 0x425   :  { %v830_v23 = vadd.f32 %v814_v24, %v3264_v62 }
 0x426   :  { %v828_v30 = vadd.f32 %v812_v27, %v3270_v2 }
 0x427   :  { %v844_v31 = vpack.c.bf16 %v830_v23, %v829_v28 }
 0x428   :  { %v2490_v34 = vpop.f32.mrb[20].mxu1  ;;  %v843_v25 = vpack.c.bf16 %v828_v30, %v827_v29 }
 0x429   :  { %v817_v26 = vmul.f32 0.9, %v2490_v34  ;;  %v764_v38 = vpop.f32.mrb[21].mxu1 }
 0x42a   :  { %v815_v40 = vmul.f32 0.9, %v764_v38  ;;  %v2491_v41 = vpop.f32.mrb[22].mxu1  ;;  %2500 = vmatprep.subr.bf16.mxu0 %v843_v25 }
 0x42b   :  { %v818_v48 = vmul.f32 0.9, %v2491_v41  ;;  %v767_v32 = vpop.f32.mrb[23].mxu1  ;;  %2501 = vmatpush3.bf16.msra.mxu0 %v843_v25  ;;  %v833_v57 = vadd.f32 %v817_v26, %v3277_v14 }
 0x42c   :  { %v816_v56 = vmul.f32 0.9, %v767_v32  ;;  %2502 = vmatprep.subr.bf16.mxu0 %v844_v31  ;;  %v831_v58 = vadd.f32 %v815_v40, %v3283_v20 }
 0x42d   :  { %v834_v33 = vadd.f32 %v818_v48, %v3280_v17 }
 0x42e   :  { %v832_v60 = vadd.f32 %v816_v56, %v3286_v21 }
 0x42f   :  { %2503 = vmatpush3.bf16.msra.mxu0 %v844_v31  ;;  %v846_v61 = vpack.c.bf16 %v834_v33, %v833_v57 }
 0x430   :  { %v2494_v63 = vpop.f32.mrb[24].mxu1  ;;  %v845_v35 = vpack.c.bf16 %v832_v60, %v831_v58 }
 0x431   :  { %v821_v36 = vmul.f32 0.9, %v2494_v63  ;;  %v780_v3 = vpop.f32.mrb[25].mxu1 }
 0x432   :  { %v819_v5 = vmul.f32 0.9, %v780_v3  ;;  %v2495_v6 = vpop.f32.mrb[26].mxu1  ;;  %2504 = vmatprep.subr.bf16.mxu0 %v845_v35 }
 0x433   :  { %v822_v10 = vmul.f32 0.9, %v2495_v6  ;;  %v783_v42 = vpop.f32.mrb[27].mxu1  ;;  %2505 = vmatpush3.bf16.msra.mxu0 %v845_v35  ;;  %v837_v12 = vadd.f32 %v821_v36, %v3293_v37 }
 0x434   :  { %v820_v11 = vmul.f32 0.9, %v783_v42  ;;  %2506 = vmatprep.subr.bf16.mxu0 %v846_v61  ;;  %v835_v13 = vadd.f32 %v819_v5, %v3299_v44 }
 0x435   :  { %v838_v43 = vadd.f32 %v822_v10, %v3296_v39 }
 0x436   :  { %v836_v15 = vadd.f32 %v820_v11, %v3302_v47 }
 0x437   :  { %2507 = vmatpush3.bf16.msra.mxu0 %v846_v61  ;;  %v848_v45 = vpack.c.bf16 %v838_v43, %v837_v12 }
 0x438   :  { %v2498_v46 = vpop.f32.mrb[28].mxu1  ;;  %v847_v16 = vpack.c.bf16 %v836_v15, %v835_v13 }
 0x439   :  { %v825_v18 = vmul.f32 0.9, %v2498_v46  ;;  %v796_v19 = vpop.f32.mrb[29].mxu1 }
 0x43a   :  { %v823_v24 = vmul.f32 0.9, %v796_v19  ;;  %v2499_v22 = vpop.f32.mrb[30].mxu1  ;;  %2508 = vmatprep.subr.bf16.mxu0 %v847_v16 }
 0x43b   :  { %v826_v27 = vmul.f32 0.9, %v2499_v22  ;;  %v799_v28 = vpop.f32.mrb[31].mxu1  ;;  %2509 = vmatpush3.bf16.msra.mxu0 %v847_v16  ;;  %v841_v29 = vadd.f32 %v825_v18, %v3309_v0 }
 0x43c   :  { %v824_v23 = vmul.f32 0.9, %v799_v28  ;;  %2510 = vmatprep.subr.bf16.mxu0 %v848_v45  ;;  %v839_v31 = vadd.f32 %v823_v24, %v3315_v8 }
 0x43d   :  { %v842_v30 = vadd.f32 %v826_v27, %v3312_v4 }
 0x43e   :  { %v840_v34 = vadd.f32 %v824_v23, %v3318_v9 }
 0x43f   :  { %2511 = vmatpush3.bf16.msra.mxu0 %v848_v45  ;;  %v850_v25 = vpack.c.bf16 %v842_v30, %v841_v29 }
 0x440   :  { %v849_v26 = vpack.c.bf16 %v840_v34, %v839_v31 }
 0x442   :  { %2512 = vmatprep.subr.bf16.mxu0 %v849_v26 }
 0x443   :  { %2513 = vmatpush3.bf16.msra.mxu0 %v849_v26 }
 0x444   :  { %2514 = vmatprep.subr.bf16.mxu0 %v850_v25 }
 0x447   :  { %2515 = vmatpush3.bf16.msra.mxu0 %v850_v25 }
 0x44a   :  { %2517 = vmatmul.mubr.bf16.vlgmr.msra.gmra.mrb[32].mxu0 %v3238_v49 }
 0x44b   :  { %2520 = vmatprep.mubr.bf16.mxu0 %v3240_v50 }
 0x452   :  { %2521 = vmatmul.mubr.bf16.gmra.mrb[36].mxu0 %v3244_v51 }
 0x453   :  { %2524 = vmatprep.mubr.bf16.mxu0 %v3246_v52 }
 0x45a   :  { %2525 = vmatmul.mubr.bf16.gmra.mrb[40].mxu0 %v3250_v53 }
 0x45b   :  { %2528 = vmatprep.mubr.bf16.mxu0 %v3252_v54 }
 0x462   :  { %2529 = vmatmul.mubr.bf16.gmra.mrb[44].mxu0 %v3256_v55 }
 0x463   :  { %2580 = vmatprep.mubr.bf16.mxu0 %v3186_v7 }
 0x51d   :  { %v2518_v38 = vpop.f32.mrb[32].mxu0 }
 0x51e   :  { %v950_v40 = vmul.f32 0.9, %v2518_v38  ;;  %v885_v41 = vpop.f32.mrb[33].mxu0 }
 0x51f   :  { %v948_v48 = vmul.f32 0.9, %v885_v41  ;;  %v2519_v32 = vpop.f32.mrb[34].mxu0 }
 0x520   :  { %v951_v56 = vmul.f32 0.9, %v2519_v32  ;;  %v888_v57 = vpop.f32.mrb[35].mxu0  ;;  %v966_v58 = vadd.f32 %v950_v40, %v3261_v59 }
 0x521   :  { %v949_v33 = vmul.f32 0.9, %v888_v57  ;;  %v964_v61 = vadd.f32 %v948_v48, %v3267_v1 }
 0x522   :  { %v967_v60 = vadd.f32 %v951_v56, %v3264_v62 }
 0x523   :  { %v965_v63 = vadd.f32 %v949_v33, %v3270_v2 }
 0x524   :  { %v981_v35 = vpack.c.bf16 %v967_v60, %v966_v58 }
 0x525   :  { %v2522_v36 = vpop.f32.mrb[36].mxu0  ;;  %v980_v3 = vpack.c.bf16 %v965_v63, %v964_v61 }
 0x526   :  { %v954_v5 = vmul.f32 0.9, %v2522_v36  ;;  %v901_v6 = vpop.f32.mrb[37].mxu0 }
 0x527   :  { %v952_v10 = vmul.f32 0.9, %v901_v6  ;;  %v2523_v42 = vpop.f32.mrb[38].mxu0  ;;  %2532 = vmatprep.subr.bf16.mxu1 %v980_v3 }
 0x528   :  { %v955_v11 = vmul.f32 0.9, %v2523_v42  ;;  %v904_v12 = vpop.f32.mrb[39].mxu0  ;;  %2533 = vmatpush3.bf16.msra.mxu1 %v980_v3  ;;  %v970_v13 = vadd.f32 %v954_v5, %v3277_v14 }
 0x529   :  { %v953_v43 = vmul.f32 0.9, %v904_v12  ;;  %2534 = vmatprep.subr.bf16.mxu1 %v981_v35  ;;  %v968_v45 = vadd.f32 %v952_v10, %v3283_v20 }
 0x52a   :  { %v971_v15 = vadd.f32 %v955_v11, %v3280_v17 }
 0x52b   :  { %v969_v46 = vadd.f32 %v953_v43, %v3286_v21 }
 0x52c   :  { %2535 = vmatpush3.bf16.msra.mxu1 %v981_v35  ;;  %v983_v16 = vpack.c.bf16 %v971_v15, %v970_v13 }
 0x52d   :  { %v2526_v18 = vpop.f32.mrb[40].mxu0  ;;  %v982_v19 = vpack.c.bf16 %v969_v46, %v968_v45 }
 0x52e   :  { %v958_v24 = vmul.f32 0.9, %v2526_v18  ;;  %v917_v22 = vpop.f32.mrb[41].mxu0 }
 0x52f   :  { %v956_v27 = vmul.f32 0.9, %v917_v22  ;;  %v2527_v28 = vpop.f32.mrb[42].mxu0  ;;  %2536 = vmatprep.subr.bf16.mxu1 %v982_v19 }
 0x530   :  { %v959_v23 = vmul.f32 0.9, %v2527_v28  ;;  %v920_v29 = vpop.f32.mrb[43].mxu0  ;;  %2537 = vmatpush3.bf16.msra.mxu1 %v982_v19  ;;  %v974_v31 = vadd.f32 %v958_v24, %v3293_v37 }
 0x531   :  { %v957_v30 = vmul.f32 0.9, %v920_v29  ;;  %2538 = vmatprep.subr.bf16.mxu1 %v983_v16  ;;  %v972_v25 = vadd.f32 %v956_v27, %v3299_v44 }
 0x532   :  { %v975_v34 = vadd.f32 %v959_v23, %v3296_v39 }
 0x533   :  { %v973_v26 = vadd.f32 %v957_v30, %v3302_v47 }
 0x534   :  { %2539 = vmatpush3.bf16.msra.mxu1 %v983_v16  ;;  %v985_v38 = vpack.c.bf16 %v975_v34, %v974_v31 }
 0x535   :  { %v2530_v40 = vpop.f32.mrb[44].mxu0  ;;  %v984_v41 = vpack.c.bf16 %v973_v26, %v972_v25 }
 0x536   :  { %v962_v48 = vmul.f32 0.9, %v2530_v40  ;;  %v933_v32 = vpop.f32.mrb[45].mxu0 }
 0x537   :  { %v960_v56 = vmul.f32 0.9, %v933_v32  ;;  %v2531_v57 = vpop.f32.mrb[46].mxu0  ;;  %2540 = vmatprep.subr.bf16.mxu1 %v984_v41 }
 0x538   :  { %v963_v33 = vmul.f32 0.9, %v2531_v57  ;;  %v936_v58 = vpop.f32.mrb[47].mxu0  ;;  %2541 = vmatpush3.bf16.msra.mxu1 %v984_v41  ;;  %v978_v61 = vadd.f32 %v962_v48, %v3309_v0 }
 0x539   :  { %v961_v60 = vmul.f32 0.9, %v936_v58  ;;  %2542 = vmatprep.subr.bf16.mxu1 %v985_v38  ;;  %v976_v35 = vadd.f32 %v960_v56, %v3315_v8 }
 0x53a   :  { %v979_v63 = vadd.f32 %v963_v33, %v3312_v4 }
 0x53b   :  { %v977_v36 = vadd.f32 %v961_v60, %v3318_v9 }
 0x53c   :  { %2543 = vmatpush3.bf16.msra.mxu1 %v985_v38  ;;  %v987_v3 = vpack.c.bf16 %v979_v63, %v978_v61 }
 0x53d   :  { %v986_v5 = vpack.c.bf16 %v977_v36, %v976_v35 }
 0x53f   :  { %2544 = vmatprep.subr.bf16.mxu1 %v986_v5 }
 0x540   :  { %2545 = vmatpush3.bf16.msra.mxu1 %v986_v5 }
 0x541   :  { %2546 = vmatprep.subr.bf16.mxu1 %v987_v3 }
 0x544   :  { %2547 = vmatpush3.bf16.msra.mxu1 %v987_v3 }
 0x547   :  { %2549 = vmatmul.mubr.bf16.vlgmr.msra.gmra.mrb[32].mxu1 %v3238_v49 }
 0x548   :  { %2552 = vmatprep.mubr.bf16.mxu1 %v3240_v50 }
 0x54f   :  { %2553 = vmatmul.mubr.bf16.gmra.mrb[36].mxu1 %v3244_v51 }
 0x550   :  { %2556 = vmatprep.mubr.bf16.mxu1 %v3246_v52 }
 0x557   :  { %2557 = vmatmul.mubr.bf16.gmra.mrb[40].mxu1 %v3250_v53 }
 0x558   :  { %2560 = vmatprep.mubr.bf16.mxu1 %v3252_v54 }
 0x55f   :  { %2561 = vmatmul.mubr.bf16.gmra.mrb[44].mxu1 %v3256_v55 }
 0x560   :  { %2612 = vmatprep.mubr.bf16.mxu1 %v3186_v7 }
 0x61a   :  { %v2550_v6 = vpop.f32.mrb[32].mxu1 }
 0x61b   :  { %v1087_v10 = vmul.f32 0.9, %v2550_v6  ;;  %v1022_v42 = vpop.f32.mrb[33].mxu1 }
 0x61c   :  { %v1085_v11 = vmul.f32 0.9, %v1022_v42  ;;  %v2551_v12 = vpop.f32.mrb[34].mxu1 }
 0x61d   :  { %v1088_v43 = vmul.f32 0.9, %v2551_v12  ;;  %v1025_v13 = vpop.f32.mrb[35].mxu1  ;;  %v1103_v45 = vadd.f32 %v1087_v10, %v3261_v59 }
 0x61e   :  { %v1086_v15 = vmul.f32 0.9, %v1025_v13  ;;  %v1101_v16 = vadd.f32 %v1085_v11, %v3267_v1 }
 0x61f   :  { %v1104_v46 = vadd.f32 %v1088_v43, %v3264_v62 }
 0x620   :  { %v1102_v18 = vadd.f32 %v1086_v15, %v3270_v2 }
 0x621   :  { %v1118_v19 = vpack.c.bf16 %v1104_v46, %v1103_v45 }
 0x622   :  { %v2554_v24 = vpop.f32.mrb[36].mxu1  ;;  %v1117_v22 = vpack.c.bf16 %v1102_v18, %v1101_v16 }
 0x623   :  { %v1091_v27 = vmul.f32 0.9, %v2554_v24  ;;  %v1038_v28 = vpop.f32.mrb[37].mxu1 }
 0x624   :  { %v1089_v23 = vmul.f32 0.9, %v1038_v28  ;;  %v2555_v29 = vpop.f32.mrb[38].mxu1  ;;  %2564 = vmatprep.subr.bf16.mxu0 %v1117_v22 }
 0x625   :  { %v1092_v30 = vmul.f32 0.9, %v2555_v29  ;;  %v1041_v31 = vpop.f32.mrb[39].mxu1  ;;  %2565 = vmatpush3.bf16.msra.mxu0 %v1117_v22  ;;  %v1107_v25 = vadd.f32 %v1091_v27, %v3277_v14 }
 0x626   :  { %v1090_v34 = vmul.f32 0.9, %v1041_v31  ;;  %2566 = vmatprep.subr.bf16.mxu0 %v1118_v19  ;;  %v1105_v38 = vadd.f32 %v1089_v23, %v3283_v20 }
 0x627   :  { %v1108_v26 = vadd.f32 %v1092_v30, %v3280_v17 }
 0x628   :  { %v1106_v40 = vadd.f32 %v1090_v34, %v3286_v21 }
 0x629   :  { %2567 = vmatpush3.bf16.msra.mxu0 %v1118_v19  ;;  %v1120_v41 = vpack.c.bf16 %v1108_v26, %v1107_v25 }
 0x62a   :  { %v2558_v48 = vpop.f32.mrb[40].mxu1  ;;  %v1119_v32 = vpack.c.bf16 %v1106_v40, %v1105_v38 }
 0x62b   :  { %v1095_v56 = vmul.f32 0.9, %v2558_v48  ;;  %v1054_v57 = vpop.f32.mrb[41].mxu1 }
 0x62c   :  { %v1093_v33 = vmul.f32 0.9, %v1054_v57  ;;  %v2559_v58 = vpop.f32.mrb[42].mxu1  ;;  %2568 = vmatprep.subr.bf16.mxu0 %v1119_v32 }
 0x62d   :  { %v1096_v60 = vmul.f32 0.9, %v2559_v58  ;;  %v1057_v61 = vpop.f32.mrb[43].mxu1  ;;  %2569 = vmatpush3.bf16.msra.mxu0 %v1119_v32  ;;  %v1111_v35 = vadd.f32 %v1095_v56, %v3293_v37 }
 0x62e   :  { %v1094_v63 = vmul.f32 0.9, %v1057_v61  ;;  %2570 = vmatprep.subr.bf16.mxu0 %v1120_v41  ;;  %v1109_v3 = vadd.f32 %v1093_v33, %v3299_v44 }
 0x62f   :  { %v1112_v36 = vadd.f32 %v1096_v60, %v3296_v39 }
 0x630   :  { %v1110_v5 = vadd.f32 %v1094_v63, %v3302_v47 }
 0x631   :  { %2571 = vmatpush3.bf16.msra.mxu0 %v1120_v41  ;;  %v1122_v6 = vpack.c.bf16 %v1112_v36, %v1111_v35 }
 0x632   :  { %v2562_v10 = vpop.f32.mrb[44].mxu1  ;;  %v1121_v42 = vpack.c.bf16 %v1110_v5, %v1109_v3 }
 0x633   :  { %v1099_v11 = vmul.f32 0.9, %v2562_v10  ;;  %v1070_v12 = vpop.f32.mrb[45].mxu1 }
 0x634   :  { %v1097_v43 = vmul.f32 0.9, %v1070_v12  ;;  %v2563_v13 = vpop.f32.mrb[46].mxu1  ;;  %2572 = vmatprep.subr.bf16.mxu0 %v1121_v42 }
 0x635   :  { %v1100_v15 = vmul.f32 0.9, %v2563_v13  ;;  %v1073_v45 = vpop.f32.mrb[47].mxu1  ;;  %2573 = vmatpush3.bf16.msra.mxu0 %v1121_v42  ;;  %v1115_v16 = vadd.f32 %v1099_v11, %v3309_v0 }
 0x636   :  { %v1098_v46 = vmul.f32 0.9, %v1073_v45  ;;  %2574 = vmatprep.subr.bf16.mxu0 %v1122_v6  ;;  %v1113_v19 = vadd.f32 %v1097_v43, %v3315_v8 }
 0x637   :  { %v1116_v18 = vadd.f32 %v1100_v15, %v3312_v4 }
 0x638   :  { %v1114_v24 = vadd.f32 %v1098_v46, %v3318_v9 }
 0x639   :  { %2575 = vmatpush3.bf16.msra.mxu0 %v1122_v6  ;;  %v1124_v22 = vpack.c.bf16 %v1116_v18, %v1115_v16 }
 0x63a   :  { %v1123_v27 = vpack.c.bf16 %v1114_v24, %v1113_v19 }
 0x63c   :  { %2576 = vmatprep.subr.bf16.mxu0 %v1123_v27 }
 0x63d   :  { %2577 = vmatpush3.bf16.msra.mxu0 %v1123_v27 }
 0x63e   :  { %2578 = vmatprep.subr.bf16.mxu0 %v1124_v22 }
 0x641   :  { %2579 = vmatpush3.bf16.msra.mxu0 %v1124_v22 }
 0x644   :  { %2581 = vmatmul.mubr.bf16.vlgmr.msra.gmra.mrb[48].mxu0 %v3238_v49 }
 0x645   :  { %2584 = vmatprep.mubr.bf16.mxu0 %v3240_v50 }
 0x64c   :  { %2585 = vmatmul.mubr.bf16.gmra.mrb[52].mxu0 %v3244_v51 }
 0x64d   :  { %2588 = vmatprep.mubr.bf16.mxu0 %v3246_v52 }
 0x654   :  { %2589 = vmatmul.mubr.bf16.gmra.mrb[56].mxu0 %v3250_v53 }
 0x655   :  { %2592 = vmatprep.mubr.bf16.mxu0 %v3252_v54 }
 0x65c   :  { %2593 = vmatmul.mubr.bf16.gmra.mrb[60].mxu0 %v3256_v55 }
 0x65d   :  { %2644 = vmatprep.mubr.bf16.mxu0 %v3186_v7 }
 0x717   :  { %v2582_v28 = vpop.f32.mrb[48].mxu0 }
 0x718   :  { %v1224_v23 = vmul.f32 0.9, %v2582_v28  ;;  %v1159_v29 = vpop.f32.mrb[49].mxu0 }
 0x719   :  { %v1222_v30 = vmul.f32 0.9, %v1159_v29  ;;  %v2583_v31 = vpop.f32.mrb[50].mxu0 }
 0x71a   :  { %v1225_v34 = vmul.f32 0.9, %v2583_v31  ;;  %v1162_v25 = vpop.f32.mrb[51].mxu0  ;;  %v1240_v38 = vadd.f32 %v1224_v23, %v3261_v59 }
 0x71b   :  { %v1223_v26 = vmul.f32 0.9, %v1162_v25  ;;  %v1238_v41 = vadd.f32 %v1222_v30, %v3267_v1 }
 0x71c   :  { %v1241_v40 = vadd.f32 %v1225_v34, %v3264_v62 }
 0x71d   :  { %v1239_v48 = vadd.f32 %v1223_v26, %v3270_v2 }
 0x71e   :  { %v1255_v32 = vpack.c.bf16 %v1241_v40, %v1240_v38 }
 0x71f   :  { %v2586_v56 = vpop.f32.mrb[52].mxu0  ;;  %v1254_v57 = vpack.c.bf16 %v1239_v48, %v1238_v41 }
 0x720   :  { %v1228_v33 = vmul.f32 0.9, %v2586_v56  ;;  %v1175_v58 = vpop.f32.mrb[53].mxu0 }
 0x721   :  { %v1226_v60 = vmul.f32 0.9, %v1175_v58  ;;  %v2587_v61 = vpop.f32.mrb[54].mxu0  ;;  %2596 = vmatprep.subr.bf16.mxu1 %v1254_v57 }
 0x722   :  { %v1229_v63 = vmul.f32 0.9, %v2587_v61  ;;  %v1178_v35 = vpop.f32.mrb[55].mxu0  ;;  %2597 = vmatpush3.bf16.msra.mxu1 %v1254_v57  ;;  %v1244_v3 = vadd.f32 %v1228_v33, %v3277_v14 }
 0x723   :  { %v1227_v36 = vmul.f32 0.9, %v1178_v35  ;;  %2598 = vmatprep.subr.bf16.mxu1 %v1255_v32  ;;  %v1242_v6 = vadd.f32 %v1226_v60, %v3283_v20 }
 0x724   :  { %v1245_v5 = vadd.f32 %v1229_v63, %v3280_v17 }
 0x725   :  { %v1243_v10 = vadd.f32 %v1227_v36, %v3286_v21 }
 0x726   :  { %2599 = vmatpush3.bf16.msra.mxu1 %v1255_v32  ;;  %v1257_v42 = vpack.c.bf16 %v1245_v5, %v1244_v3 }
 0x727   :  { %v2590_v11 = vpop.f32.mrb[56].mxu0  ;;  %v1256_v12 = vpack.c.bf16 %v1243_v10, %v1242_v6 }
 0x728   :  { %v1232_v43 = vmul.f32 0.9, %v2590_v11  ;;  %v1191_v13 = vpop.f32.mrb[57].mxu0 }
 0x729   :  { %v1230_v15 = vmul.f32 0.9, %v1191_v13  ;;  %v2591_v45 = vpop.f32.mrb[58].mxu0  ;;  %2600 = vmatprep.subr.bf16.mxu1 %v1256_v12 }
 0x72a   :  { %v1233_v46 = vmul.f32 0.9, %v2591_v45  ;;  %v1194_v16 = vpop.f32.mrb[59].mxu0  ;;  %2601 = vmatpush3.bf16.msra.mxu1 %v1256_v12  ;;  %v1248_v19 = vadd.f32 %v1232_v43, %v3293_v37 }
 0x72b   :  { %v1231_v18 = vmul.f32 0.9, %v1194_v16  ;;  %2602 = vmatprep.subr.bf16.mxu1 %v1257_v42  ;;  %v1246_v22 = vadd.f32 %v1230_v15, %v3299_v44 }
 0x72c   :  { %v1249_v24 = vadd.f32 %v1233_v46, %v3296_v39 }
 0x72d   :  { %v1247_v27 = vadd.f32 %v1231_v18, %v3302_v47 }
 0x72e   :  { %2603 = vmatpush3.bf16.msra.mxu1 %v1257_v42  ;;  %v1259_v28 = vpack.c.bf16 %v1249_v24, %v1248_v19 }
 0x72f   :  { %v2594_v23 = vpop.f32.mrb[60].mxu0  ;;  %v1258_v29 = vpack.c.bf16 %v1247_v27, %v1246_v22 }
 0x730   :  { %v1236_v30 = vmul.f32 0.9, %v2594_v23  ;;  %v1207_v31 = vpop.f32.mrb[61].mxu0 }
 0x731   :  { %v1234_v34 = vmul.f32 0.9, %v1207_v31  ;;  %v2595_v25 = vpop.f32.mrb[62].mxu0  ;;  %2604 = vmatprep.subr.bf16.mxu1 %v1258_v29 }
 0x732   :  { %v1237_v26 = vmul.f32 0.9, %v2595_v25  ;;  %v1210_v38 = vpop.f32.mrb[63].mxu0  ;;  %2605 = vmatpush3.bf16.msra.mxu1 %v1258_v29  ;;  %v1252_v41 = vadd.f32 %v1236_v30, %v3309_v0 }
 0x733   :  { %v1235_v40 = vmul.f32 0.9, %v1210_v38  ;;  %2606 = vmatprep.subr.bf16.mxu1 %v1259_v28  ;;  %v1250_v32 = vadd.f32 %v1234_v34, %v3315_v8 }
 0x734   :  { %v1253_v48 = vadd.f32 %v1237_v26, %v3312_v4 }
 0x735   :  { %v1251_v56 = vadd.f32 %v1235_v40, %v3318_v9 }
 0x736   :  { %2607 = vmatpush3.bf16.msra.mxu1 %v1259_v28  ;;  %v1261_v57 = vpack.c.bf16 %v1253_v48, %v1252_v41 }
 0x737   :  { %v1260_v33 = vpack.c.bf16 %v1251_v56, %v1250_v32 }
 0x739   :  { %2608 = vmatprep.subr.bf16.mxu1 %v1260_v33 }
 0x73a   :  { %2609 = vmatpush3.bf16.msra.mxu1 %v1260_v33 }
 0x73b   :  { %2610 = vmatprep.subr.bf16.mxu1 %v1261_v57 }
 0x73e   :  { %2611 = vmatpush3.bf16.msra.mxu1 %v1261_v57 }
 0x741   :  { %2613 = vmatmul.mubr.bf16.vlgmr.msra.gmra.mrb[48].mxu1 %v3238_v49 }
 0x742   :  { %2616 = vmatprep.mubr.bf16.mxu1 %v3240_v50 }
 0x749   :  { %2617 = vmatmul.mubr.bf16.gmra.mrb[52].mxu1 %v3244_v51 }
 0x74a   :  { %2620 = vmatprep.mubr.bf16.mxu1 %v3246_v52 }
 0x751   :  { %2621 = vmatmul.mubr.bf16.gmra.mrb[56].mxu1 %v3250_v53 }
 0x752   :  { %2624 = vmatprep.mubr.bf16.mxu1 %v3252_v54 }
 0x759   :  { %2625 = vmatmul.mubr.bf16.gmra.mrb[60].mxu1 %v3256_v55 }
 0x75a   :  { %2676 = vmatprep.mubr.bf16.mxu1 %v3186_v7 }
 0x814   :  { %v2614_v58 = vpop.f32.mrb[48].mxu1 }
 0x815   :  { %v1361_v60 = vmul.f32 0.9, %v2614_v58  ;;  %v1296_v61 = vpop.f32.mrb[49].mxu1 }
 0x816   :  { %v1359_v63 = vmul.f32 0.9, %v1296_v61  ;;  %v2615_v35 = vpop.f32.mrb[50].mxu1 }
 0x817   :  { %v1362_v36 = vmul.f32 0.9, %v2615_v35  ;;  %v1299_v3 = vpop.f32.mrb[51].mxu1  ;;  %v1377_v6 = vadd.f32 %v1361_v60, %v3261_v59 }
 0x818   :  { %v1360_v5 = vmul.f32 0.9, %v1299_v3  ;;  %v1375_v42 = vadd.f32 %v1359_v63, %v3267_v1 }
 0x819   :  { %v1378_v10 = vadd.f32 %v1362_v36, %v3264_v62 }
 0x81a   :  { %v1376_v11 = vadd.f32 %v1360_v5, %v3270_v2 }
 0x81b   :  { %v1392_v12 = vpack.c.bf16 %v1378_v10, %v1377_v6 }
 0x81c   :  { %v2618_v43 = vpop.f32.mrb[52].mxu1  ;;  %v1391_v13 = vpack.c.bf16 %v1376_v11, %v1375_v42 }
 0x81d   :  { %v1365_v7 = vmul.f32 0.9, %v2618_v43  ;;  %v1312_v15 = vpop.f32.mrb[53].mxu1 }
 0x81e   :  { %v1363_v45 = vmul.f32 0.9, %v1312_v15  ;;  %v2619_v46 = vpop.f32.mrb[54].mxu1  ;;  %2628 = vmatprep.subr.bf16.mxu0 %v1391_v13 }
 0x81f   :  { %v1366_v16 = vmul.f32 0.9, %v2619_v46  ;;  %v1315_v18 = vpop.f32.mrb[55].mxu1  ;;  %2629 = vmatpush3.bf16.msra.mxu0 %v1391_v13  ;;  %v1381_v24 = vadd.f32 %v1365_v7, %v3277_v14  ;;  %v3451_v7 = vld [vmem:[#allocation5] sm:$0xff]  }
 0x820   :  { %v1364_v19 = vmul.f32 0.9, %v1315_v18  ;;  %2630 = vmatprep.subr.bf16.mxu0 %v1392_v12  ;;  %v1379_v27 = vadd.f32 %v1363_v45, %v3283_v20 }
 0x821   :  { %v1382_v22 = vadd.f32 %v1366_v16, %v3280_v17 }
 0x822   :  { %v1380_v28 = vadd.f32 %v1364_v19, %v3286_v21 }
 0x823   :  { %2631 = vmatpush3.bf16.msra.mxu0 %v1392_v12  ;;  %v1394_v23 = vpack.c.bf16 %v1382_v22, %v1381_v24 }
 0x824   :  { %v2622_v29 = vpop.f32.mrb[56].mxu1  ;;  %v1393_v30 = vpack.c.bf16 %v1380_v28, %v1379_v27 }
 0x825   :  { %v1369_v31 = vmul.f32 0.9, %v2622_v29  ;;  %v1328_v34 = vpop.f32.mrb[57].mxu1 }
 0x826   :  { %v1367_v25 = vmul.f32 0.9, %v1328_v34  ;;  %v2623_v26 = vpop.f32.mrb[58].mxu1  ;;  %2632 = vmatprep.subr.bf16.mxu0 %v1393_v30 }
 0x827   :  { %v1370_v38 = vmul.f32 0.9, %v2623_v26  ;;  %v1331_v40 = vpop.f32.mrb[59].mxu1  ;;  %2633 = vmatpush3.bf16.msra.mxu0 %v1393_v30  ;;  %v1385_v48 = vadd.f32 %v1369_v31, %v3293_v37 }
 0x828   :  { %v1368_v41 = vmul.f32 0.9, %v1331_v40  ;;  %2634 = vmatprep.subr.bf16.mxu0 %v1394_v23  ;;  %v1383_v56 = vadd.f32 %v1367_v25, %v3299_v44 }
 0x829   :  { %v1386_v32 = vadd.f32 %v1370_v38, %v3296_v39 }
 0x82a   :  { %v1384_v57 = vadd.f32 %v1368_v41, %v3302_v47 }
 0x82b   :  { %2635 = vmatpush3.bf16.msra.mxu0 %v1394_v23  ;;  %v1396_v33 = vpack.c.bf16 %v1386_v32, %v1385_v48 }
 0x82c   :  { %v2626_v58 = vpop.f32.mrb[60].mxu1  ;;  %v1395_v60 = vpack.c.bf16 %v1384_v57, %v1383_v56 }
 0x82d   :  { %v1373_v61 = vmul.f32 0.9, %v2626_v58  ;;  %v1344_v63 = vpop.f32.mrb[61].mxu1 }
 0x82e   :  { %v1371_v35 = vmul.f32 0.9, %v1344_v63  ;;  %v2627_v36 = vpop.f32.mrb[62].mxu1  ;;  %2636 = vmatprep.subr.bf16.mxu0 %v1395_v60 }
 0x82f   :  { %v1374_v3 = vmul.f32 0.9, %v2627_v36  ;;  %v1347_v5 = vpop.f32.mrb[63].mxu1  ;;  %2637 = vmatpush3.bf16.msra.mxu0 %v1395_v60  ;;  %v1389_v10 = vadd.f32 %v1373_v61, %v3309_v0 }
 0x830   :  { %v1372_v6 = vmul.f32 0.9, %v1347_v5  ;;  %2638 = vmatprep.subr.bf16.mxu0 %v1396_v33  ;;  %v1387_v11 = vadd.f32 %v1371_v35, %v3315_v8 }
 0x831   :  { %v1390_v42 = vadd.f32 %v1374_v3, %v3312_v4 }
 0x832   :  { %v1388_v12 = vadd.f32 %v1372_v6, %v3318_v9 }
 0x833   :  { %2639 = vmatpush3.bf16.msra.mxu0 %v1396_v33  ;;  %v1398_v43 = vpack.c.bf16 %v1390_v42, %v1389_v10 }
 0x834   :  { %v1397_v13 = vpack.c.bf16 %v1388_v12, %v1387_v11 }
 0x836   :  { %2640 = vmatprep.subr.bf16.mxu0 %v1397_v13 }
 0x837   :  { %2641 = vmatpush3.bf16.msra.mxu0 %v1397_v13 }
 0x838   :  { %2642 = vmatprep.subr.bf16.mxu0 %v1398_v43 }
 0x83b   :  { %2643 = vmatpush3.bf16.msra.mxu0 %v1398_v43 }
 0x83e   :  { %2645 = vmatmul.mubr.bf16.vlgmr.msra.gmra.mrb[64].mxu0 %v3238_v49 }
 0x83f   :  { %2648 = vmatprep.mubr.bf16.mxu0 %v3240_v50 }
 0x846   :  { %2649 = vmatmul.mubr.bf16.gmra.mrb[68].mxu0 %v3244_v51 }
 0x847   :  { %2652 = vmatprep.mubr.bf16.mxu0 %v3246_v52 }
 0x84e   :  { %2653 = vmatmul.mubr.bf16.gmra.mrb[72].mxu0 %v3250_v53 }
 0x84f   :  { %2656 = vmatprep.mubr.bf16.mxu0 %v3252_v54 }
 0x856   :  { %2657 = vmatmul.mubr.bf16.gmra.mrb[76].mxu0 %v3256_v55 }
 0x857   :  { %2708 = vmatprep.mubr.bf16.mxu0 %v3451_v7 }
 0x911   :  { %v2646_v15 = vpop.f32.mrb[64].mxu0 }
 0x912   :  { %v1498_v45 = vmul.f32 0.9, %v2646_v15  ;;  %v1433_v46 = vpop.f32.mrb[65].mxu0 }
 0x913   :  { %v1496_v49 = vmul.f32 0.9, %v1433_v46  ;;  %v2647_v16 = vpop.f32.mrb[66].mxu0 }
 0x914   :  { %v1499_v50 = vmul.f32 0.9, %v2647_v16  ;;  %v1436_v18 = vpop.f32.mrb[67].mxu0  ;;  %v1514_v52 = vadd.f32 %v1498_v45, %v3261_v59 }
 0x915   :  { %v1497_v51 = vmul.f32 0.9, %v1436_v18  ;;  %v1512_v54 = vadd.f32 %v1496_v49, %v3267_v1 }
 0x916   :  { %v1515_v53 = vadd.f32 %v1499_v50, %v3264_v62 }
 0x917   :  { %v1513_v55 = vadd.f32 %v1497_v51, %v3270_v2 }
 0x918   :  { %v1529_v19 = vpack.c.bf16 %v1515_v53, %v1514_v52  ;;  %v3470_v53 = vld [vmem:[#allocation5 + $0x8] sm:$0xff]  }
 0x919   :  { %v2650_v24 = vpop.f32.mrb[68].mxu0  ;;  %v1528_v22 = vpack.c.bf16 %v1513_v55, %v1512_v54  ;;  %v3473_v54 = vld [vmem:[#allocation5 + $0x10] sm:$0xff]   ;;  %v3476_v55 = vld [vmem:[#allocation5 + $0x18] sm:$0xff]  }
 0x91a   :  { %v1502_v27 = vmul.f32 0.9, %v2650_v24  ;;  %v1449_v28 = vpop.f32.mrb[69].mxu0  ;;  %v3482_v24 = vld [vmem:[#allocation5 + $0x28] sm:$0xff]  }
 0x91b   :  { %v1500_v23 = vmul.f32 0.9, %v1449_v28  ;;  %v2651_v29 = vpop.f32.mrb[70].mxu0  ;;  %2660 = vmatprep.subr.bf16.mxu1 %v1528_v22 }
 0x91c   :  { %v1503_v30 = vmul.f32 0.9, %v2651_v29  ;;  %v1452_v31 = vpop.f32.mrb[71].mxu0  ;;  %2661 = vmatpush3.bf16.msra.mxu1 %v1528_v22  ;;  %v1518_v25 = vadd.f32 %v1502_v27, %v3277_v14  ;;  %v3485_v22 = vld [vmem:[#allocation5 + $0x30] sm:$0xff]   ;;  %v3488_v27 = vld [vmem:[#allocation5 + $0x38] sm:$0xff]  }
 0x91d   :  { %v1501_v34 = vmul.f32 0.9, %v1452_v31  ;;  %2662 = vmatprep.subr.bf16.mxu1 %v1529_v19  ;;  %v1516_v38 = vadd.f32 %v1500_v23, %v3283_v20 }
 0x91e   :  { %v1519_v26 = vadd.f32 %v1503_v30, %v3280_v17 }
 0x91f   :  { %v1517_v40 = vadd.f32 %v1501_v34, %v3286_v21 }
 0x920   :  { %2663 = vmatpush3.bf16.msra.mxu1 %v1529_v19  ;;  %v1531_v41 = vpack.c.bf16 %v1519_v26, %v1518_v25  ;;  %v3479_v19 = vld [vmem:[#allocation5 + $0x20] sm:$0xff]  }
 0x921   :  { %v2654_v48 = vpop.f32.mrb[72].mxu0  ;;  %v1530_v32 = vpack.c.bf16 %v1517_v40, %v1516_v38 }
 0x922   :  { %v1506_v56 = vmul.f32 0.9, %v2654_v48  ;;  %v1465_v57 = vpop.f32.mrb[73].mxu0 }
 0x923   :  { %v1504_v33 = vmul.f32 0.9, %v1465_v57  ;;  %v2655_v58 = vpop.f32.mrb[74].mxu0  ;;  %2664 = vmatprep.subr.bf16.mxu1 %v1530_v32 }
 0x924   :  { %v1507_v60 = vmul.f32 0.9, %v2655_v58  ;;  %v1468_v61 = vpop.f32.mrb[75].mxu0  ;;  %2665 = vmatpush3.bf16.msra.mxu1 %v1530_v32  ;;  %v1522_v35 = vadd.f32 %v1506_v56, %v3293_v37 }
 0x925   :  { %v1505_v63 = vmul.f32 0.9, %v1468_v61  ;;  %2666 = vmatprep.subr.bf16.mxu1 %v1531_v41  ;;  %v1520_v3 = vadd.f32 %v1504_v33, %v3299_v44 }
 0x926   :  { %v1523_v36 = vadd.f32 %v1507_v60, %v3296_v39 }
 0x927   :  { %v1521_v5 = vadd.f32 %v1505_v63, %v3302_v47 }
 0x928   :  { %2667 = vmatpush3.bf16.msra.mxu1 %v1531_v41  ;;  %v1533_v6 = vpack.c.bf16 %v1523_v36, %v1522_v35 }
 0x929   :  { %v2658_v10 = vpop.f32.mrb[76].mxu0  ;;  %v1532_v42 = vpack.c.bf16 %v1521_v5, %v1520_v3 }
 0x92a   :  { %v1510_v11 = vmul.f32 0.9, %v2658_v10  ;;  %v1481_v12 = vpop.f32.mrb[77].mxu0 }
 0x92b   :  { %v1508_v43 = vmul.f32 0.9, %v1481_v12  ;;  %v2659_v13 = vpop.f32.mrb[78].mxu0  ;;  %2668 = vmatprep.subr.bf16.mxu1 %v1532_v42 }
 0x92c   :  { %v1511_v15 = vmul.f32 0.9, %v2659_v13  ;;  %v1484_v45 = vpop.f32.mrb[79].mxu0  ;;  %2669 = vmatpush3.bf16.msra.mxu1 %v1532_v42  ;;  %v1526_v49 = vadd.f32 %v1510_v11, %v3309_v0 }
 0x92d   :  { %v1509_v46 = vmul.f32 0.9, %v1484_v45  ;;  %2670 = vmatprep.subr.bf16.mxu1 %v1533_v6  ;;  %v1524_v50 = vadd.f32 %v1508_v43, %v3315_v8 }
 0x92e   :  { %v1527_v16 = vadd.f32 %v1511_v15, %v3312_v4 }
 0x92f   :  { %v1525_v18 = vadd.f32 %v1509_v46, %v3318_v9 }
 0x930   :  { %2671 = vmatpush3.bf16.msra.mxu1 %v1533_v6  ;;  %v1535_v51 = vpack.c.bf16 %v1527_v16, %v1526_v49 }
 0x931   :  { %v1534_v52 = vpack.c.bf16 %v1525_v18, %v1524_v50 }
 0x933   :  { %2672 = vmatprep.subr.bf16.mxu1 %v1534_v52 }
 0x934   :  { %2673 = vmatpush3.bf16.msra.mxu1 %v1534_v52 }
 0x935   :  { %2674 = vmatprep.subr.bf16.mxu1 %v1535_v51 }
 0x938   :  { %2675 = vmatpush3.bf16.msra.mxu1 %v1535_v51 }
 0x93b   :  { %2677 = vmatmul.mubr.bf16.vlgmr.msra.gmra.mrb[64].mxu1 %v3470_v53 }
 0x93c   :  { %2680 = vmatprep.mubr.bf16.mxu1 %v3473_v54 }
 0x943   :  { %2681 = vmatmul.mubr.bf16.gmra.mrb[68].mxu1 %v3476_v55 }
 0x944   :  { %2684 = vmatprep.mubr.bf16.mxu1 %v3479_v19 }
 0x94b   :  { %2685 = vmatmul.mubr.bf16.gmra.mrb[72].mxu1 %v3482_v24 }
 0x94c   :  { %2688 = vmatprep.mubr.bf16.mxu1 %v3485_v22 }
 0x953   :  { %2689 = vmatmul.mubr.bf16.gmra.mrb[76].mxu1 %v3488_v27 }
 0x954   :  { %2740 = vmatprep.mubr.bf16.mxu1 %v3451_v7 }
 0xa0e   :  { %v2678_v28 = vpop.f32.mrb[64].mxu1 }
 0xa0f   :  { %v1635_v23 = vmul.f32 0.9, %v2678_v28  ;;  %v1570_v29 = vpop.f32.mrb[65].mxu1 }
 0xa10   :  { %v1633_v30 = vmul.f32 0.9, %v1570_v29  ;;  %v2679_v31 = vpop.f32.mrb[66].mxu1 }
 0xa11   :  { %v1636_v34 = vmul.f32 0.9, %v2679_v31  ;;  %v1573_v25 = vpop.f32.mrb[67].mxu1  ;;  %v1651_v38 = vadd.f32 %v1635_v23, %v3261_v59 }
 0xa12   :  { %v1634_v26 = vmul.f32 0.9, %v1573_v25  ;;  %v1649_v41 = vadd.f32 %v1633_v30, %v3267_v1 }
 0xa13   :  { %v1652_v40 = vadd.f32 %v1636_v34, %v3264_v62 }
 0xa14   :  { %v1650_v48 = vadd.f32 %v1634_v26, %v3270_v2 }
 0xa15   :  { %v1666_v32 = vpack.c.bf16 %v1652_v40, %v1651_v38 }
 0xa16   :  { %v2682_v56 = vpop.f32.mrb[68].mxu1  ;;  %v1665_v57 = vpack.c.bf16 %v1650_v48, %v1649_v41 }
 0xa17   :  { %v1639_v7 = vmul.f32 0.9, %v2682_v56  ;;  %v1586_v33 = vpop.f32.mrb[69].mxu1 }
 0xa18   :  { %v1637_v58 = vmul.f32 0.9, %v1586_v33  ;;  %v2683_v60 = vpop.f32.mrb[70].mxu1  ;;  %2692 = vmatprep.subr.bf16.mxu0 %v1665_v57 }
 0xa19   :  { %v1640_v61 = vmul.f32 0.9, %v2683_v60  ;;  %v1589_v63 = vpop.f32.mrb[71].mxu1  ;;  %2693 = vmatpush3.bf16.msra.mxu0 %v1665_v57  ;;  %v1655_v36 = vadd.f32 %v1639_v7, %v3277_v14 }
 0xa1a   :  { %v1638_v35 = vmul.f32 0.9, %v1589_v63  ;;  %2694 = vmatprep.subr.bf16.mxu0 %v1666_v32  ;;  %v1653_v5 = vadd.f32 %v1637_v58, %v3283_v20 }
 0xa1b   :  { %v1656_v3 = vadd.f32 %v1640_v61, %v3280_v17 }
 0xa1c   :  { %v1654_v6 = vadd.f32 %v1638_v35, %v3286_v21 }
 0xa1d   :  { %2695 = vmatpush3.bf16.msra.mxu0 %v1666_v32  ;;  %v1668_v10 = vpack.c.bf16 %v1656_v3, %v1655_v36 }
 0xa1e   :  { %v2686_v42 = vpop.f32.mrb[72].mxu1  ;;  %v1667_v11 = vpack.c.bf16 %v1654_v6, %v1653_v5 }
 0xa1f   :  { %v1643_v12 = vmul.f32 0.9, %v2686_v42  ;;  %v1602_v43 = vpop.f32.mrb[73].mxu1 }
 0xa20   :  { %v1641_v13 = vmul.f32 0.9, %v1602_v43  ;;  %v2687_v15 = vpop.f32.mrb[74].mxu1  ;;  %2696 = vmatprep.subr.bf16.mxu0 %v1667_v11 }
 0xa21   :  { %v1644_v45 = vmul.f32 0.9, %v2687_v15  ;;  %v1605_v46 = vpop.f32.mrb[75].mxu1  ;;  %2697 = vmatpush3.bf16.msra.mxu0 %v1667_v11  ;;  %v1659_v16 = vadd.f32 %v1643_v12, %v3293_v37 }
 0xa22   :  { %v1642_v49 = vmul.f32 0.9, %v1605_v46  ;;  %2698 = vmatprep.subr.bf16.mxu0 %v1668_v10  ;;  %v1657_v18 = vadd.f32 %v1641_v13, %v3299_v44 }
 0xa23   :  { %v1660_v50 = vadd.f32 %v1644_v45, %v3296_v39 }
 0xa24   :  { %v1658_v51 = vadd.f32 %v1642_v49, %v3302_v47 }
 0xa25   :  { %2699 = vmatpush3.bf16.msra.mxu0 %v1668_v10  ;;  %v1670_v52 = vpack.c.bf16 %v1660_v50, %v1659_v16 }
 0xa26   :  { %v2690_v28 = vpop.f32.mrb[76].mxu1  ;;  %v1669_v23 = vpack.c.bf16 %v1658_v51, %v1657_v18 }
 0xa27   :  { %v1647_v29 = vmul.f32 0.9, %v2690_v28  ;;  %v1618_v30 = vpop.f32.mrb[77].mxu1 }
 0xa28   :  { %v1645_v31 = vmul.f32 0.9, %v1618_v30  ;;  %v2691_v34 = vpop.f32.mrb[78].mxu1  ;;  %2700 = vmatprep.subr.bf16.mxu0 %v1669_v23 }
 0xa29   :  { %v1648_v25 = vmul.f32 0.9, %v2691_v34  ;;  %v1621_v26 = vpop.f32.mrb[79].mxu1  ;;  %2701 = vmatpush3.bf16.msra.mxu0 %v1669_v23  ;;  %v1663_v40 = vadd.f32 %v1647_v29, %v3309_v0 }
 0xa2a   :  { %v1646_v38 = vmul.f32 0.9, %v1621_v26  ;;  %2702 = vmatprep.subr.bf16.mxu0 %v1670_v52  ;;  %v1661_v48 = vadd.f32 %v1645_v31, %v3315_v8 }
 0xa2b   :  { %v1664_v41 = vadd.f32 %v1648_v25, %v3312_v4 }
 0xa2c   :  { %v1662_v32 = vadd.f32 %v1646_v38, %v3318_v9 }
 0xa2d   :  { %2703 = vmatpush3.bf16.msra.mxu0 %v1670_v52  ;;  %v1672_v56 = vpack.c.bf16 %v1664_v41, %v1663_v40 }
 0xa2e   :  { %v1671_v57 = vpack.c.bf16 %v1662_v32, %v1661_v48 }
 0xa30   :  { %2704 = vmatprep.subr.bf16.mxu0 %v1671_v57 }
 0xa31   :  { %2705 = vmatpush3.bf16.msra.mxu0 %v1671_v57 }
 0xa32   :  { %2706 = vmatprep.subr.bf16.mxu0 %v1672_v56 }
 0xa35   :  { %2707 = vmatpush3.bf16.msra.mxu0 %v1672_v56 }
 0xa38   :  { %2709 = vmatmul.mubr.bf16.vlgmr.msra.gmra.mrb[80].mxu0 %v3470_v53 }
 0xa39   :  { %2712 = vmatprep.mubr.bf16.mxu0 %v3473_v54 }
 0xa40   :  { %2713 = vmatmul.mubr.bf16.gmra.mrb[84].mxu0 %v3476_v55 }
 0xa41   :  { %2716 = vmatprep.mubr.bf16.mxu0 %v3479_v19 }
 0xa48   :  { %2717 = vmatmul.mubr.bf16.gmra.mrb[88].mxu0 %v3482_v24 }
 0xa49   :  { %2720 = vmatprep.mubr.bf16.mxu0 %v3485_v22 }
 0xa50   :  { %2721 = vmatmul.mubr.bf16.gmra.mrb[92].mxu0 %v3488_v27 }
 0xb0b   :  { %v2710_v7 = vpop.f32.mrb[80].mxu0 }
 0xb0c   :  { %v1772_v33 = vmul.f32 0.9, %v2710_v7  ;;  %v1707_v58 = vpop.f32.mrb[81].mxu0 }
 0xb0d   :  { %v1770_v60 = vmul.f32 0.9, %v1707_v58  ;;  %v2711_v61 = vpop.f32.mrb[82].mxu0 }
 0xb0e   :  { %v1773_v63 = vmul.f32 0.9, %v2711_v61  ;;  %v1710_v35 = vpop.f32.mrb[83].mxu0  ;;  %v1788_v3 = vadd.f32 %v1772_v33, %v3261_v59 }
 0xb0f   :  { %v1771_v36 = vmul.f32 0.9, %v1710_v35  ;;  %v1786_v6 = vadd.f32 %v1770_v60, %v3267_v1 }
 0xb10   :  { %v1789_v5 = vadd.f32 %v1773_v63, %v3264_v62 }
 0xb11   :  { %v1787_v10 = vadd.f32 %v1771_v36, %v3270_v2 }
 0xb12   :  { %v1803_v42 = vpack.c.bf16 %v1789_v5, %v1788_v3 }
 0xb13   :  { %v2714_v11 = vpop.f32.mrb[84].mxu0  ;;  %v1802_v12 = vpack.c.bf16 %v1787_v10, %v1786_v6 }
 0xb14   :  { %v1776_v43 = vmul.f32 0.9, %v2714_v11  ;;  %v1723_v13 = vpop.f32.mrb[85].mxu0 }
 0xb15   :  { %v1774_v15 = vmul.f32 0.9, %v1723_v13  ;;  %v2715_v45 = vpop.f32.mrb[86].mxu0  ;;  %2724 = vmatprep.subr.bf16.mxu1 %v1802_v12 }
 0xb16   :  { %v1777_v46 = vmul.f32 0.9, %v2715_v45  ;;  %v1726_v49 = vpop.f32.mrb[87].mxu0  ;;  %2725 = vmatpush3.bf16.msra.mxu1 %v1802_v12  ;;  %v1792_v50 = vadd.f32 %v1776_v43, %v3277_v14  ;;  %v1939_v43 = vlaneseq }
 0xb17   :  { %v1775_v16 = vmul.f32 0.9, %v1726_v49  ;;  %2726 = vmatprep.subr.bf16.mxu1 %v1803_v42  ;;  %v1790_v51 = vadd.f32 %v1774_v15, %v3283_v20 }
 0xb18   :  { %v1793_v18 = vadd.f32 %v1777_v46, %v3280_v17  ;;  %v3538_v13 = vand.u32 127, %v1939_v43 }
 0xb19   :  { %v1791_v52 = vadd.f32 %v1775_v16, %v3286_v21 }
 0xb1a   :  { %2727 = vmatpush3.bf16.msra.mxu1 %v1803_v42  ;;  %v1805_v28 = vpack.c.bf16 %v1793_v18, %v1792_v50  ;;  %vm1941_vm2 = vcmp.lt.s32.totalorder %v3538_v13, 16 }
 0xb1b   :  { %v2718_v23 = vpop.f32.mrb[88].mxu0  ;;  %v1804_v29 = vpack.c.bf16 %v1791_v52, %v1790_v51 }
 0xb1c   :  { %v1780_v30 = vmul.f32 0.9, %v2718_v23  ;;  %v1739_v31 = vpop.f32.mrb[89].mxu0 }
 0xb1d   :  { %v1778_v34 = vmul.f32 0.9, %v1739_v31  ;;  %v2719_v25 = vpop.f32.mrb[90].mxu0  ;;  %2728 = vmatprep.subr.bf16.mxu1 %v1804_v29 }
 0xb1e   :  { %v1781_v26 = vmul.f32 0.9, %v2719_v25  ;;  %v1742_v38 = vpop.f32.mrb[91].mxu0  ;;  %2729 = vmatpush3.bf16.msra.mxu1 %v1804_v29  ;;  %v1796_v41 = vadd.f32 %v1780_v30, %v3293_v37 }
 0xb1f   :  { %v1779_v40 = vmul.f32 0.9, %v1742_v38  ;;  %2730 = vmatprep.subr.bf16.mxu1 %v1805_v28  ;;  %v1794_v32 = vadd.f32 %v1778_v34, %v3299_v44 }
 0xb20   :  { %v1797_v48 = vadd.f32 %v1781_v26, %v3296_v39 }
 0xb21   :  { %v1795_v56 = vadd.f32 %v1779_v40, %v3302_v47 }
 0xb22   :  { %2731 = vmatpush3.bf16.msra.mxu1 %v1805_v28  ;;  %v1807_v57 = vpack.c.bf16 %v1797_v48, %v1796_v41 }
 0xb23   :  { %v2722_v7 = vpop.f32.mrb[92].mxu0  ;;  %v1806_v33 = vpack.c.bf16 %v1795_v56, %v1794_v32 }
 0xb24   :  { %v1784_v58 = vmul.f32 0.9, %v2722_v7  ;;  %v1755_v60 = vpop.f32.mrb[93].mxu0 }
 0xb25   :  { %v1782_v61 = vmul.f32 0.9, %v1755_v60  ;;  %v2723_v63 = vpop.f32.mrb[94].mxu0  ;;  %2732 = vmatprep.subr.bf16.mxu1 %v1806_v33 }
 0xb26   :  { %v1785_v35 = vmul.f32 0.9, %v2723_v63  ;;  %v1758_v36 = vpop.f32.mrb[95].mxu0  ;;  %2733 = vmatpush3.bf16.msra.mxu1 %v1806_v33  ;;  %v1800_v5 = vadd.f32 %v1784_v58, %v3309_v0 }
 0xb27   :  { %v1783_v3 = vmul.f32 0.9, %v1758_v36  ;;  %2734 = vmatprep.subr.bf16.mxu1 %v1807_v57  ;;  %v1798_v10 = vadd.f32 %v1782_v61, %v3315_v8 }
 0xb28   :  { %v1801_v6 = vadd.f32 %v1785_v35, %v3312_v4 }
 0xb29   :  { %v1799_v42 = vadd.f32 %v1783_v3, %v3318_v9 }
 0xb2a   :  { %2735 = vmatpush3.bf16.msra.mxu1 %v1807_v57  ;;  %v1809_v11 = vpack.c.bf16 %v1801_v6, %v1800_v5 }
 0xb2b   :  { %v1808_v12 = vpack.c.bf16 %v1799_v42, %v1798_v10 }
 0xb2d   :  { %2736 = vmatprep.subr.bf16.mxu1 %v1808_v12 }
 0xb2e   :  { %2737 = vmatpush3.bf16.msra.mxu1 %v1808_v12 }
 0xb2f   :  { %2738 = vmatprep.subr.bf16.mxu1 %v1809_v11 }
 0xb32   :  { %2739 = vmatpush3.bf16.msra.mxu1 %v1809_v11 }
 0xb35   :  { %2741 = vmatmul.mubr.bf16.vlgmr.msra.gmra.mrb[80].mxu1 %v3470_v53 }
 0xb36   :  { %2744 = vmatprep.mubr.bf16.mxu1 %v3473_v54 }
 0xb3d   :  { %2745 = vmatmul.mubr.bf16.gmra.mrb[84].mxu1 %v3476_v55 }
 0xb3e   :  { %2748 = vmatprep.mubr.bf16.mxu1 %v3479_v19 }
 0xb45   :  { %2749 = vmatmul.mubr.bf16.gmra.mrb[88].mxu1 %v3482_v24 }
 0xb46   :  { %2752 = vmatprep.mubr.bf16.mxu1 %v3485_v22 }
 0xb4d   :  { %2753 = vmatmul.mubr.bf16.gmra.mrb[92].mxu1 %v3488_v27 }
 0xc08   :  { %v2742_v15 = vpop.f32.mrb[80].mxu1 }
 0xc09   :  { %v1909_v45 = vmul.f32 0.9, %v2742_v15  ;;  %v1844_v46 = vpop.f32.mrb[81].mxu1 }
 0xc0a   :  { %v1907_v49 = vmul.f32 0.9, %v1844_v46  ;;  %v2743_v53 = vpop.f32.mrb[82].mxu1 }
 0xc0b   :  { %v1910_v54 = vmul.f32 0.9, %v2743_v53  ;;  %v1847_v55 = vpop.f32.mrb[83].mxu1  ;;  %v3542_v19 = vadd.f32 %v1909_v45, %v3261_v59 }
 0xc0c   :  { %v1908_v24 = vmul.f32 0.9, %v1847_v55  ;;  %v3545_v22 = vadd.f32 %v1907_v49, %v3267_v1 }
 0xc0d   :  { %v1944_v27 = vsel %vm1941_vm2, %v3542_v19, -1e+30  ;;  %v3551_v16 = vadd.f32 %v1910_v54, %v3264_v62 }
 0xc0e   :  { %1962 = vmax.xlane.f32.xlu1 %v1944_v27  ;;  %v1942_v50 = vsel %vm1941_vm2, %v3545_v22, -1e+30  ;;  %v3557_v18 = vadd.f32 %v1908_v24, %v3270_v2 }
 0xc0f   :  { %1958 = vmax.xlane.f32.xlu0 %v1942_v50  ;;  %v1945_v52 = vsel %vm1941_vm2, %v3551_v16, -1e+30 }
 0xc10   :  { %v2746_v59 = vpop.f32.mrb[84].mxu1  ;;  %v1943_v23 = vsel %vm1941_vm2, %v3557_v18, -1e+30 }
 0xc11   :  { %v1913_v51 = vmul.f32 0.9, %v2746_v59  ;;  %v1860_v1 = vpop.f32.mrb[85].mxu1 }
 0xc12   :  { %v1911_v28 = vmul.f32 0.9, %v1860_v1  ;;  %1964 = vmax.xlane.f32.xlu1 %v1945_v52  ;;  %v2747_v62 = vpop.f32.mrb[86].mxu1 }
 0xc13   :  { %v1914_v29 = vmul.f32 0.9, %v2747_v62  ;;  %1960 = vmax.xlane.f32.xlu0 %v1943_v23  ;;  %v1863_v30 = vpop.f32.mrb[87].mxu1  ;;  %v3566_v2 = vadd.f32 %v1913_v51, %v3277_v14 }
 0xc14   :  { %v1912_v31 = vmul.f32 0.9, %v1863_v30  ;;  %v3575_v26 = vadd.f32 %v1911_v28, %v3283_v20 }
 0xc15   :  { %v1948_v34 = vsel %vm1941_vm2, %v3566_v2, -1e+30  ;;  %v3572_v25 = vadd.f32 %v1914_v29, %v3280_v17 }
 0xc16   :  { %v3581_v40 = vadd.f32 %v1912_v31, %v3286_v21  ;;  %v1946_v17 = vsel %vm1941_vm2, %v3575_v26, -1e+30 }
 0xc17   :  { %1970 = vmax.xlane.f32.xlu0 %v1948_v34  ;;  %v1949_v38 = vsel %vm1941_vm2, %v3572_v25, -1e+30 }
 0xc18   :  { %1972 = vmax.xlane.f32.xlu1 %v1949_v38  ;;  %v2750_v14 = vpop.f32.mrb[88].mxu1  ;;  %v1947_v7 = vsel %vm1941_vm2, %v3581_v40, -1e+30 }
 0xc19   :  { %v1917_v41 = vmul.f32 0.9, %v2750_v14  ;;  %v1876_v48 = vpop.f32.mrb[89].mxu1 }
 0xc1a   :  { %v1915_v32 = vmul.f32 0.9, %v1876_v48  ;;  %v2751_v56 = vpop.f32.mrb[90].mxu1 }
 0xc1b   :  { %v1918_v20 = vmul.f32 0.9, %v2751_v56  ;;  %1966 = vmax.xlane.f32.xlu0 %v1946_v17  ;;  %v1879_v57 = vpop.f32.mrb[91].mxu1  ;;  %v3590_v21 = vadd.f32 %v1917_v41, %v3293_v37 }
 0xc1c   :  { %v1916_v33 = vmul.f32 0.9, %v1879_v57  ;;  %1968 = vmax.xlane.f32.xlu1 %v1947_v7  ;;  %v3599_v61 = vadd.f32 %v1915_v32, %v3299_v44 }
 0xc1d   :  { %v1952_v58 = vsel %vm1941_vm2, %v3590_v21, -1e+30  ;;  %v3596_v60 = vadd.f32 %v1918_v20, %v3296_v39 }
 0xc1e   :  { %v3605_v37 = vadd.f32 %v1916_v33, %v3302_v47  ;;  %v1950_v3 = vsel %vm1941_vm2, %v3599_v61, -1e+30 }
 0xc1f   :  { %1978 = vmax.xlane.f32.xlu0 %v1952_v58  ;;  %v1953_v63 = vsel %vm1941_vm2, %v3596_v60, -1e+30 }
 0xc20   :  { %1980 = vmax.xlane.f32.xlu1 %v1953_v63  ;;  %v2754_v35 = vpop.f32.mrb[92].mxu1  ;;  %v1951_v10 = vsel %vm1941_vm2, %v3605_v37, -1e+30 }
 0xc21   :  { %v1892_v36 = vpop.f32.mrb[93].mxu1  ;;  %v1921_v39 = vmul.f32 0.9, %v2754_v35 }
 0xc22   :  { %v1919_v5 = vmul.f32 0.9, %v1892_v36  ;;  %v2755_v6 = vpop.f32.mrb[94].mxu1 }
 0xc23   :  { %1974 = vmax.xlane.f32.xlu0 %v1950_v3  ;;  %v1895_v44 = vpop.f32.mrb[95].mxu1  ;;  %v1922_v42 = vmul.f32 0.9, %v2755_v6  ;;  %v3623_v15 = vadd.f32 %v1921_v39, %v3309_v0 }
 0xc24   :  { %v1920_v11 = vmul.f32 0.9, %v1895_v44  ;;  %1976 = vmax.xlane.f32.xlu1 %v1951_v10  ;;  %v3614_v47 = vadd.f32 %v1919_v5, %v3315_v8 }
 0xc25   :  { %v3629_v46 = vadd.f32 %v1922_v42, %v3312_v4  ;;  %v1956_v8 = vsel %vm1941_vm2, %v3623_v15, -1e+30 }
 0xc26   :  { %v3617_v12 = vadd.f32 %v1920_v11, %v3318_v9  ;;  %v1954_v43 = vsel %vm1941_vm2, %v3614_v47, -1e+30 }
 0xc27   :  { %1982 = vmax.xlane.f32.xlu0 %v1954_v43  ;;  %v1957_v9 = vsel %vm1941_vm2, %v3629_v46, -1e+30 }
 0xc28   :  { %v1955_v45 = vsel %vm1941_vm2, %v3617_v12, -1e+30 }
 0xc29   :  { %1984 = vmax.xlane.f32.xlu1 %v1955_v45 }
 0xc2b   :  { %1986 = vmax.xlane.f32.xlu0 %v1956_v8 }
 0xc2d   :  { %1988 = vmax.xlane.f32.xlu1 %v1957_v9 }
 0xc9b   :  { %v1963_v0 = vpop.xlane.xlu1 %1962 }
 0xc9c   :  { %v3638_v49 = vsub.f32 %v3542_v19, %v1963_v0  ;;  %v1959_v53 = vpop.xlane.xlu0 %1958 }
 0xc9d   :  { %v3641_v54 = vsub.f32 %v3545_v22, %v1959_v53 }
 0xc9e   :  { %v2008_v4 = vsel %vm1941_vm2, %v3638_v49, -1e+30 }
 0xc9f   :  { %v2026_v55 = vmul.f32 1.442695, %v2008_v4  ;;  %v2006_v24 = vsel %vm1941_vm2, %v3641_v54, -1e+30  ;;  %v1965_v27 = vpop.xlane.xlu1 %1964 }
 0xca0   :  { %v2022_v50 = vmul.f32 1.442695, %v2006_v24  ;;  %v3650_v59 = vsub.f32 %v3551_v16, %v1965_v27  ;;  %v1961_v19 = vpop.xlane.xlu0 %1960 }
 0xca1   :  { %2789 = vpow2.f32 %v2026_v55  ;;  %v3653_v51 = vsub.f32 %v3557_v18, %v1961_v19 }
 0xca2   :  { %v2009_v22 = vsel %vm1941_vm2, %v3650_v59, -1e+30  ;;  %2791 = vpow2.f32 %v2022_v50 }
 0xca3   :  { %v2028_v1 = vmul.f32 1.442695, %v2009_v22  ;;  %v2007_v52 = vsel %vm1941_vm2, %v3653_v51, -1e+30 }
 0xca4   :  { %v1971_v28 = vpop.xlane.xlu0 %1970  ;;  %v2024_v62 = vmul.f32 1.442695, %v2007_v52 }
 0xca5   :  { %2793 = vpow2.f32 %v2028_v1  ;;  %v3662_v16 = vsub.f32 %v3566_v2, %v1971_v28  ;;  %v1973_v23 = vpop.xlane.xlu1 %1972 }
 0xca6   :  { %v3665_v18 = vsub.f32 %v3572_v25, %v1973_v23  ;;  %2795 = vpow2.f32 %v2024_v62 }
 0xca7   :  { %v2012_v29 = vsel %vm1941_vm2, %v3662_v16, -1e+30 }
 0xca8   :  { %v2034_v30 = vmul.f32 1.442695, %v2012_v29  ;;  %v2013_v31 = vsel %vm1941_vm2, %v3665_v18, -1e+30  ;;  %v1967_v34 = vpop.xlane.xlu0 %1966 }
 0xca9   :  { %v2036_v38 = vmul.f32 1.442695, %v2013_v31  ;;  %v3674_v14 = vsub.f32 %v3575_v26, %v1967_v34  ;;  %v1969_v2 = vpop.xlane.xlu1 %1968 }
 0xcaa   :  { %2797 = vpow2.f32 %v2034_v30  ;;  %v3677_v25 = vsub.f32 %v3581_v40, %v1969_v2 }
 0xcab   :  { %v2790_v41 = vpop.eup %2789  ;;  %v2010_v48 = vsel %vm1941_vm2, %v3674_v14, -1e+30  ;;  %2799 = vpow2.f32 %v2036_v38 }
 0xcac   :  { %v2030_v32 = vmul.f32 1.442695, %v2010_v48  ;;  %v2011_v56 = vsel %vm1941_vm2, %v3677_v25, -1e+30  ;;  %v1979_v17 = vpop.xlane.xlu0 %1978  ;;  %2058 = vadd.xlane.f32.xlu0 %v2790_v41  ;;  %v2792_v40 = vpop.eup %2791 }
 0xcad   :  { %v2032_v26 = vmul.f32 1.442695, %v2011_v56  ;;  %v3686_v20 = vsub.f32 %v3590_v21, %v1979_v17  ;;  %v1981_v57 = vpop.xlane.xlu1 %1980 }
 0xcae   :  { %2801 = vpow2.f32 %v2030_v32  ;;  %v3689_v7 = vsub.f32 %v3596_v60, %v1981_v57 }
 0xcaf   :  { %v2794_v33 = vpop.eup %2793  ;;  %v2016_v58 = vsel %vm1941_vm2, %v3686_v20, -1e+30  ;;  %2803 = vpow2.f32 %v2032_v26 }
 0xcb0   :  { %v2042_v63 = vmul.f32 1.442695, %v2016_v58  ;;  %v2017_v35 = vsel %vm1941_vm2, %v3689_v7, -1e+30  ;;  %v1975_v36 = vpop.xlane.xlu0 %1974  ;;  %2054 = vadd.xlane.f32.xlu0 %v2792_v40  ;;  %2060 = vadd.xlane.f32.xlu1 %v2794_v33  ;;  %v2796_v5 = vpop.eup %2795 }
 0xcb1   :  { %v2044_v21 = vmul.f32 1.442695, %v2017_v35  ;;  %v3698_v3 = vsub.f32 %v3599_v61, %v1975_v36  ;;  %v1977_v60 = vpop.xlane.xlu1 %1976 }
 0xcb2   :  { %2805 = vpow2.f32 %v2042_v63  ;;  %v3701_v39 = vsub.f32 %v3605_v37, %v1977_v60 }
 0xcb3   :  { %v2014_v6 = vsel %vm1941_vm2, %v3698_v3, -1e+30  ;;  %2807 = vpow2.f32 %v2044_v21 }
 0xcb4   :  { %v2798_v44 = vpop.eup %2797  ;;  %v2038_v10 = vmul.f32 1.442695, %v2014_v6  ;;  %v2015_v42 = vsel %vm1941_vm2, %v3701_v39, -1e+30  ;;  %v1983_v11 = vpop.xlane.xlu0 %1982  ;;  %2056 = vadd.xlane.f32.xlu1 %v2796_v5 }
 0xcb5   :  { %v2040_v61 = vmul.f32 1.442695, %v2015_v42  ;;  %v3710_v43 = vsub.f32 %v3614_v47, %v1983_v11  ;;  %2066 = vadd.xlane.f32.xlu0 %v2798_v44  ;;  %v2800_v45 = vpop.eup %2799 }
 0xcb6   :  { %2809 = vpow2.f32 %v2038_v10  ;;  %v1985_v37 = vpop.xlane.xlu1 %1984 }
 0xcb7   :  { %v2018_v8 = vsel %vm1941_vm2, %v3710_v43, -1e+30  ;;  %v3716_v9 = vsub.f32 %v3617_v12, %v1985_v37  ;;  %2811 = vpow2.f32 %v2040_v61 }
 0xcb8   :  { %v2802_v0 = vpop.eup %2801  ;;  %v2046_v53 = vmul.f32 1.442695, %v2018_v8  ;;  %v1987_v4 = vpop.xlane.xlu0 %1986  ;;  %2068 = vadd.xlane.f32.xlu1 %v2800_v45 }
 0xcb9   :  { %v2019_v47 = vsel %vm1941_vm2, %v3716_v9, -1e+30  ;;  %v3722_v55 = vsub.f32 %v3623_v15, %v1987_v4  ;;  %2062 = vadd.xlane.f32.xlu0 %v2802_v0  ;;  %v2804_v50 = vpop.eup %2803 }
 0xcba   :  { %2813 = vpow2.f32 %v2046_v53  ;;  %v2048_v24 = vmul.f32 1.442695, %v2019_v47  ;;  %v1989_v27 = vpop.xlane.xlu1 %1988 }
 0xcbb   :  { %v2020_v12 = vsel %vm1941_vm2, %v3722_v55, -1e+30  ;;  %v3728_v19 = vsub.f32 %v3629_v46, %v1989_v27 }
 0xcbc   :  { %v2806_v22 = vpop.eup %2805  ;;  %2815 = vpow2.f32 %v2048_v24  ;;  %v2050_v1 = vmul.f32 1.442695, %v2020_v12  ;;  %2064 = vadd.xlane.f32.xlu1 %v2804_v50 }
 0xcbd   :  { %v2021_v15 = vsel %vm1941_vm2, %v3728_v19, -1e+30  ;;  %2074 = vadd.xlane.f32.xlu0 %v2806_v22  ;;  %v2808_v28 = vpop.eup %2807 }
 0xcbe   :  { %2817 = vpow2.f32 %v2050_v1  ;;  %v2052_v52 = vmul.f32 1.442695, %v2021_v15 }
 0xcc0   :  { %v2810_v62 = vpop.eup %2809  ;;  %2819 = vpow2.f32 %v2052_v52  ;;  %2076 = vadd.xlane.f32.xlu1 %v2808_v28 }
 0xcc1   :  { %2070 = vadd.xlane.f32.xlu0 %v2810_v62  ;;  %v2812_v23 = vpop.eup %2811 }
 0xcc4   :  { %v2814_v29 = vpop.eup %2813  ;;  %2072 = vadd.xlane.f32.xlu1 %v2812_v23 }
 0xcc5   :  { %2078 = vadd.xlane.f32.xlu0 %v2814_v29 }
 0xcc6   :  { %v2816_v46 = vpop.eup %2815 }
 0xcc8   :  { %v2818_v30 = vpop.eup %2817  ;;  %2080 = vadd.xlane.f32.xlu1 %v2816_v46 }
 0xcc9   :  { %2082 = vadd.xlane.f32.xlu0 %v2818_v30 }
 0xcca   :  { %v2820_v31 = vpop.eup %2819 }
 0xccc   :  { %2084 = vadd.xlane.f32.xlu1 %v2820_v31 }
 0xd39   :  { %v2059_v13 = vpop.xlane.xlu0 %2058 }
 0xd3a   :  { %2821 = vlog2.f32 %v2059_v13 }
 0xd3d   :  { %v2055_v34 = vpop.xlane.xlu0 %2054  ;;  %v2061_v38 = vpop.xlane.xlu1 %2060 }
 0xd3e   :  { %2823 = vlog2.f32 %v2055_v34 }
 0xd3f   :  { %2825 = vlog2.f32 %v2061_v38 }
 0xd41   :  { %v2057_v2 = vpop.xlane.xlu1 %2056 }
 0xd42   :  { %2827 = vlog2.f32 %v2057_v2  ;;  %v2067_v41 = vpop.xlane.xlu0 %2066 }
 0xd43   :  { %2829 = vlog2.f32 %v2067_v41 }
 0xd44   :  { %v2822_v48 = vpop.eup %2821 }
 0xd45   :  { %v2091_v32 = vmul.f32 0.6931472, %v2822_v48  ;;  %v2069_v56 = vpop.xlane.xlu1 %2068 }
 0xd46   :  { %2831 = vlog2.f32 %v2069_v56  ;;  %v2063_v17 = vpop.xlane.xlu0 %2062 }
 0xd47   :  { %v2120_v26 = vsub.f32 %v3638_v49, %v2091_v32  ;;  %2833 = vlog2.f32 %v2063_v17 }
 0xd48   :  { %v2824_v57 = vpop.eup %2823 }
 0xd49   :  { %v2826_v40 = vpop.eup %2825  ;;  %2136 = vst [vmem:[#allocation13 + $0x10] sm:$0xff] %v2120_v26  ;;  %v2087_v33 = vmul.f32 0.6931472, %v2824_v57  ;;  %v2065_v58 = vpop.xlane.xlu1 %2064 }
 0xd4a   :  { %v2093_v63 = vmul.f32 0.6931472, %v2826_v40  ;;  %2835 = vlog2.f32 %v2065_v58  ;;  %v2075_v35 = vpop.xlane.xlu0 %2074 }
 0xd4b   :  { %v2118_v36 = vsub.f32 %v3641_v54, %v2087_v33  ;;  %2837 = vlog2.f32 %v2075_v35 }
 0xd4c   :  { %v2828_v21 = vpop.eup %2827  ;;  %v2121_v60 = vsub.f32 %v3650_v59, %v2093_v63 }
 0xd4d   :  { %v2830_v5 = vpop.eup %2829  ;;  %2134 = vst [vmem:[#allocation13] sm:$0xff] %v2118_v36  ;;  %v2089_v6 = vmul.f32 0.6931472, %v2828_v21  ;;  %v2077_v44 = vpop.xlane.xlu1 %2076 }
 0xd4e   :  { %2137 = vst [vmem:[#allocation13 + $0x18] sm:$0xff] %v2121_v60  ;;  %v2099_v49 = vmul.f32 0.6931472, %v2830_v5  ;;  %2839 = vlog2.f32 %v2077_v44  ;;  %v2071_v10 = vpop.xlane.xlu0 %2070 }
 0xd4f   :  { %v2119_v42 = vsub.f32 %v3653_v51, %v2089_v6  ;;  %2841 = vlog2.f32 %v2071_v10 }
 0xd50   :  { %v2832_v11 = vpop.eup %2831  ;;  %v2124_v61 = vsub.f32 %v3662_v16, %v2099_v49 }
 0xd51   :  { %v2834_v37 = vpop.eup %2833  ;;  %2135 = vst [vmem:[#allocation13 + $0x8] sm:$0xff] %v2119_v42  ;;  %v2101_v54 = vmul.f32 0.6931472, %v2832_v11  ;;  %v2073_v45 = vpop.xlane.xlu1 %2072 }
 0xd52   :  { %2140 = vst [vmem:[#allocation13 + $0x30] sm:$0xff] %v2124_v61  ;;  %v2095_v59 = vmul.f32 0.6931472, %v2834_v37  ;;  %2843 = vlog2.f32 %v2073_v45  ;;  %v2079_v8 = vpop.xlane.xlu0 %2078 }
 0xd53   :  { %v2125_v0 = vsub.f32 %v3665_v18, %v2101_v54  ;;  %2845 = vlog2.f32 %v2079_v8 }
 0xd54   :  { %v2836_v53 = vpop.eup %2835  ;;  %v2122_v4 = vsub.f32 %v3674_v14, %v2095_v59 }
 0xd55   :  { %v2838_v47 = vpop.eup %2837  ;;  %2141 = vst [vmem:[#allocation13 + $0x38] sm:$0xff] %v2125_v0  ;;  %v2097_v51 = vmul.f32 0.6931472, %v2836_v53  ;;  %v2081_v24 = vpop.xlane.xlu1 %2080 }
 0xd56   :  { %2138 = vst [vmem:[#allocation13 + $0x20] sm:$0xff] %v2122_v4  ;;  %v2107_v16 = vmul.f32 0.6931472, %v2838_v47  ;;  %2847 = vlog2.f32 %v2081_v24  ;;  %v2083_v27 = vpop.xlane.xlu0 %2082 }
 0xd57   :  { %v2123_v50 = vsub.f32 %v3677_v25, %v2097_v51  ;;  %2849 = vlog2.f32 %v2083_v27 }
 0xd58   :  { %v2840_v12 = vpop.eup %2839  ;;  %v2128_v22 = vsub.f32 %v3686_v20, %v2107_v16 }
 0xd59   :  { %v2842_v1 = vpop.eup %2841  ;;  %2139 = vst [vmem:[#allocation13 + $0x28] sm:$0xff] %v2123_v50  ;;  %v2109_v18 = vmul.f32 0.6931472, %v2840_v12  ;;  %v2085_v15 = vpop.xlane.xlu1 %2084 }
 0xd5a   :  { %2144 = vst [vmem:[#allocation13 + $0x50] sm:$0xff] %v2128_v22  ;;  %v2103_v14 = vmul.f32 0.6931472, %v2842_v1  ;;  %2851 = vlog2.f32 %v2085_v15 }
 0xd5b   :  { %v2129_v52 = vsub.f32 %v3689_v7, %v2109_v18 }
 0xd5c   :  { %v2844_v28 = vpop.eup %2843  ;;  %v2126_v62 = vsub.f32 %v3698_v3, %v2103_v14 }
 0xd5d   :  { %v2846_v23 = vpop.eup %2845  ;;  %2145 = vst [vmem:[#allocation13 + $0x58] sm:$0xff] %v2129_v52  ;;  %v2105_v29 = vmul.f32 0.6931472, %v2844_v28 }
 0xd5e   :  { %2142 = vst [vmem:[#allocation13 + $0x40] sm:$0xff] %v2126_v62  ;;  %v2111_v25 = vmul.f32 0.6931472, %v2846_v23 }
 0xd5f   :  { %v2127_v46 = vsub.f32 %v3701_v39, %v2105_v29 }
 0xd60   :  { %v2848_v20 = vpop.eup %2847  ;;  %v2130_v30 = vsub.f32 %v3710_v43, %v2111_v25 }
 0xd61   :  { %v2850_v31 = vpop.eup %2849  ;;  %2143 = vst [vmem:[#allocation13 + $0x48] sm:$0xff] %v2127_v46  ;;  %v2113_v13 = vmul.f32 0.6931472, %v2848_v20 }
 0xd62   :  { %2146 = vst [vmem:[#allocation13 + $0x60] sm:$0xff] %v2130_v30  ;;  %v2115_v34 = vmul.f32 0.6931472, %v2850_v31 }
 0xd63   :  { %v2131_v7 = vsub.f32 %v3716_v9, %v2113_v13 }
 0xd64   :  { %v2852_v38 = vpop.eup %2851  ;;  %v2132_v3 = vsub.f32 %v3722_v55, %v2115_v34 }
 0xd65   :  { %2147 = vst [vmem:[#allocation13 + $0x68] sm:$0xff] %v2131_v7  ;;  %v2117_v2 = vmul.f32 0.6931472, %v2852_v38 }
 0xd66   :  { %2148 = vst [vmem:[#allocation13 + $0x70] sm:$0xff] %v2132_v3 }
 0xd67   :  { %v2133_v39 = vsub.f32 %v3728_v19, %v2117_v2 }
 0xd69   :  { %2149 = vst [vmem:[#allocation13 + $0x78] sm:$0xff] %v2133_v39 }
 0xd6a   :  { %3004 = shalt.err (!%p3001_p10)
}
 0xd6b   :  { %s3005_s22 = scalar_lea.hbm %s3767_s6, 2048 }
 0xd6c   :  { %p3006_p11 = scmp.ne.s32.totalorder %s3767_s6, %s3005_s22  ;;  %p3009_p12 = scmp.lt.u32.totalorder %s3005_s22, %s3767_s6 }
 0xd6e   :  { %p3011_p13 = pnand %p3009_p12, %p3006_p11 }
 0xd70   :  { %3014 = shalt.err (!%p3011_p13)
}
 0xd71   :  { %s3034_s29 = smov 128   ;;  %s3035_s30 = smov 8  }
 0xd72   :  { %2161 = dma.vmem_to_hbm [thread:$0]  %s2156_s10, 2048, %s3767_s6, [#allocation4], %s3034_s29, %s3034_s29, %s3035_s30  }
 0xd73   :  { %3023 = dma.done.wait [#allocation4], 2048  }
 0xd74   :  { %3024 = vsyncadd [#allocation4], 4294965248 }
 0xd75   :  { %2165 = vsyncpa [#allocation3], 1 }
 0xd76   :  { %2166 = vsyncpa [#allocation6], 1 }
 0xd77   :  { %2167 = vsyncpa [#allocation9], 1 }
 0xd78   :  { %2168 = vsyncpa [#allocation12], 1 }
 0xd79   :  { %2169 = vsyncpa [#allocation4], 1 }

</bundles_post_ra>
